<compile_context>
chip_gen: v7x
topology: tpu7x:2x2x1
jax: 0.10.0
libtpu: 0.0.40
codegen_flags: <defaults>
</compile_context>

<pallas_src>
import functools

import jax
import jax.numpy as jnp
from jax import lax
from jax.experimental import pallas as pl
from jax.experimental.pallas import tpu as pltpu

# ----------------------------- model hyper-params (small) -----------------------------
VOCAB = 16            # len(word_to_ix) in the reference script is 1; small synthetic vocab
EMBED_DIM = 32        # embedding_dim
HIDDEN_DIM = 32       # hidden_dim (bidirectional -> per-direction hidden = HIDDEN_DIM // 2)
NUM_LAYERS = 2        # num_layers
NUM_CLASSES = 8       # num_classes
BATCH = 2
SEQ = 8

HID_DIR = HIDDEN_DIM // 2     # per-direction hidden size (16)
G4 = 4 * HID_DIR              # 4 gates, one direction, packed (64)
G8 = 8 * HID_DIR              # 4 gates x 2 directions, packed (128 lanes)


def _vmem():
    return pl.BlockSpec(memory_space=pltpu.MemorySpace.VMEM)


# =============================== fused forward pieces ===============================

def _emissions(ids_ref, emb_ref, wih_ref, whh_ref, b_ref, fcw_ref, fcb_ref,
               xproj_scr, outf_scr, outb_scr, em_scr, *, t_len, bsz):
    """Embedding -> bidirectional multi-layer LSTM -> FC, fully resident in VMEM.

    Writes emissions into em_scr with flat time-major layout (row t*bsz + b).
    """
    n = t_len * bsz
    hd = outf_scr.shape[-1]
    g4 = 4 * hd
    g8 = 8 * hd
    vocab = emb_ref.shape[0]
    num_layers = wih_ref.shape[0]

    # ---- embedding lookup as a one-hot matmul (tiny vocab lives in VMEM) ----
    ids = ids_ref[...]                                                    # (n, 1) int32
    onehot = (lax.broadcasted_iota(jnp.int32, (n, vocab), 1) == ids).astype(jnp.float32)
    x_flat = jnp.dot(onehot, emb_ref[...], preferred_element_type=jnp.float32)   # (n, E)

    for layer in range(num_layers):
        # Hoisted input projection: one matmul covers every timestep, both directions
        # and all 4 gates; bias folded in.  Result is 128 lanes wide (dense vreg).
        xproj_scr[...] = (jnp.dot(x_flat, wih_ref[layer],
                                  preferred_element_type=jnp.float32) + b_ref[layer])

        whh = whh_ref[layer]                                              # (2*hd, 8*hd) block-diag

        def step(t, carry):
            h_cat, c_cat = carry                                          # (B, 2*hd) each
            tb = t_len - 1 - t
            # single fused recurrent matmul: both directions, all 4 gates
            rec = jnp.dot(h_cat, whh, preferred_element_type=jnp.float32)  # (B, 8*hd)
            xp_f = xproj_scr[pl.ds(t * bsz, bsz), :]                       # (B, 8*hd)
            xp_b = xproj_scr[pl.ds(tb * bsz, bsz), :]
            pre_f = xp_f[:, 0:g4] + rec[:, 0:g4]
            pre_b = xp_b[:, g4:g8] + rec[:, g4:g8]

            def cell(pre, c_prev):
                i_g = jax.nn.sigmoid(pre[:, 0:hd])
                f_g = jax.nn.sigmoid(pre[:, hd:2 * hd])
                g_g = jnp.tanh(pre[:, 2 * hd:3 * hd])
                o_g = jax.nn.sigmoid(pre[:, 3 * hd:4 * hd])
                c_new = f_g * c_prev + i_g * g_g
                return o_g * jnp.tanh(c_new), c_new

            h_f, c_f = cell(pre_f, c_cat[:, 0:hd])
            h_b, c_b = cell(pre_b, c_cat[:, hd:2 * hd])
            outf_scr[pl.ds(t * bsz, bsz), :] = h_f
            outb_scr[pl.ds(tb * bsz, bsz), :] = h_b
            return (jnp.concatenate([h_f, h_b], axis=-1),
                    jnp.concatenate([c_f, c_b], axis=-1))

        z = jnp.zeros((bsz, 2 * hd), jnp.float32)
        lax.fori_loop(0, t_len, step, (z, z))

        # next-layer input: [fwd | bwd] per timestep, already flat time-major
        x_flat = jnp.concatenate([outf_scr[...], outb_scr[...]], axis=-1)  # (n, 2*hd)

    # dropout(0.2) is an identity in eval mode.
    # ---- FC emissions for every timestep in one matmul ----
    em_scr[...] = (jnp.dot(x_flat, fcw_ref[...], preferred_element_type=jnp.float32)
                   + fcb_ref[...])


def decode_kernel(ids_ref, emb_ref, wih_ref, whh_ref, b_ref, fcw_ref, fcb_ref,
                  start_ref, end_ref, trT_ref, pred_ref,
                  xproj_scr, outf_scr, outb_scr, em_scr, hist_scr, path_scr,
                  *, t_len, bsz):
    """Fused forward + CRF Viterbi decode (torchcrf semantics, mask = all ones)."""
    ncls = trT_ref.shape[0]
    _emissions(ids_ref, emb_ref, wih_ref, whh_ref, b_ref, fcw_ref, fcb_ref,
               xproj_scr, outf_scr, outb_scr, em_scr, t_len=t_len, bsz=bsz)

    tr_t = trT_ref[...]                                                    # tr_t[j, i] = trans[i, j]
    lane2 = lax.broadcasted_iota(jnp.int32, (bsz, ncls), 1)
    lane3f = lax.broadcasted_iota(jnp.int32, (bsz, ncls, ncls), 2).astype(jnp.float32)

    score0 = start_ref[...] + em_scr[pl.ds(0, bsz), :]                     # (B, C)

    def fwd(t, score):
        em_t = em_scr[pl.ds(t * bsz, bsz), :]
        # vectorized max over previous tag: cand[b, j, i] = score[b, i] + trans[i, j]
        cand = score[:, None, :] + tr_t[None, :, :]                        # (B, C, C)
        best_val = jnp.max(cand, axis=-1)                                  # (B, C)
        is_max = cand == best_val[:, :, None]
        best_idx = jnp.min(jnp.where(is_max, lane3f, float(ncls)),
                           axis=-1).astype(jnp.int32)                      # (B, C) best prev tag
        hist_scr[t] = best_idx
        return best_val + em_t

    score = lax.fori_loop(1, t_len, fwd, score0)

    final = score + end_ref[...]
    maxv = jnp.max(final, axis=1, keepdims=True)
    best_last = jnp.min(jnp.where(final == maxv, lane2, jnp.int32(ncls)),
                        axis=1, keepdims=True).astype(jnp.int32)           # (B, 1)
    path_scr[t_len - 1] = best_last

    def back(i, best_next):
        t = t_len - 2 - i
        hist_t1 = hist_scr[t + 1]                                          # (B, C) int32
        sel = lane2 == best_next
        best_t = jnp.sum(jnp.where(sel, hist_t1, 0), axis=1,
                         keepdims=True).astype(jnp.int32)
        path_scr[t] = best_t
        return best_t

    lax.fori_loop(0, t_len - 1, back, best_last)

    # single dense (B, T) int32 store of the decoded tag sequence
    pred_ref[...] = jnp.concatenate([path_scr[t] for t in range(t_len)], axis=-1)


def loss_kernel(ids_ref, lab_ref, emb_ref, wih_ref, whh_ref, b_ref, fcw_ref, fcb_ref,
                start_ref, end_ref, tr_ref, trT_ref, loss_ref,
                xproj_scr, outf_scr, outb_scr, em_scr, *, t_len, bsz):
    """Fused forward + CRF negative log-likelihood (sum over batch, mask = all ones)."""
    ncls = tr_ref.shape[0]
    _emissions(ids_ref, emb_ref, wih_ref, whh_ref, b_ref, fcw_ref, fcb_ref,
               xproj_scr, outf_scr, outb_scr, em_scr, t_len=t_len, bsz=bsz)

    tr = tr_ref[...]
    tr_t = trT_ref[...]
    lane2 = lax.broadcasted_iota(jnp.int32, (bsz, ncls), 1)

    em0 = em_scr[pl.ds(0, bsz), :]
    oh0 = (lane2 == lab_ref[pl.ds(0, bsz), :]).astype(jnp.float32)         # (B, C)
    num0 = jnp.sum((start_ref[...] + em0) * oh0, axis=1, keepdims=True)    # gold path score
    alpha0 = start_ref[...] + em0                                          # forward-algorithm scores

    def step(t, carry):
        num, oh_prev, alpha = carry
        em_t = em_scr[pl.ds(t * bsz, bsz), :]
        oh_t = (lane2 == lab_ref[pl.ds(t * bsz, bsz), :]).astype(jnp.float32)
        trans_row = jnp.dot(oh_prev, tr, preferred_element_type=jnp.float32)   # trans[lab_{t-1}, :]
        num = num + jnp.sum((trans_row + em_t) * oh_t, axis=1, keepdims=True)
        # vectorized stable logsumexp over previous tag
        cand = alpha[:, None, :] + tr_t[None, :, :]                        # (B, C, C)
        m = jnp.max(cand, axis=-1)                                         # (B, C)
        lse = m + jnp.log(jnp.sum(jnp.exp(cand - m[:, :, None]), axis=-1))
        return (num, oh_t, lse + em_t)

    num, oh_last, alpha = lax.fori_loop(1, t_len, step, (num0, oh0, alpha0))
    num = num + jnp.sum(end_ref[...] * oh_last, axis=1, keepdims=True)
    af = alpha + end_ref[...]
    mf = jnp.max(af, axis=1, keepdims=True)
    denom = mf + jnp.log(jnp.sum(jnp.exp(af - mf), axis=1, keepdims=True))
    llh = num - denom                                                      # (B, 1)
    loss_ref[...] = -jnp.sum(llh, axis=0, keepdims=True)                   # (1, 1)


# =============================== wrappers (glue) ===============================

def _scratch_common(n):
    return [pltpu.VMEM((n, G8), jnp.float32),          # packed input projection
            pltpu.VMEM((n, HID_DIR), jnp.float32),     # fwd hidden outputs (flat time-major)
            pltpu.VMEM((n, HID_DIR), jnp.float32),     # bwd hidden outputs (flat time-major)
            pltpu.VMEM((n, NUM_CLASSES), jnp.float32)]  # emissions


def bilstm_crf_forward(params, input_ids, labels=None):
    bsz, t_len = input_ids.shape
    n = bsz * t_len
    ids_flat = input_ids.T.reshape(n, 1).astype(jnp.int32)                 # flat time-major ids
    crf = params["crf"]
    trans_t = crf["trans"].T
    common = (params["emb"], params["wih"], params["whh"], params["b"],
              params["fc_w"], params["fc_b"], crf["start"], crf["end"])

    if labels is None:
        return pl.pallas_call(
            functools.partial(decode_kernel, t_len=t_len, bsz=bsz),
            out_shape=jax.ShapeDtypeStruct((bsz, t_len), jnp.int32),
            in_specs=[_vmem()] * 10,
            out_specs=_vmem(),
            scratch_shapes=_scratch_common(n) + [
                pltpu.VMEM((t_len, bsz, NUM_CLASSES), jnp.int32),          # Viterbi backpointers
                pltpu.VMEM((t_len, bsz, 1), jnp.int32)],                   # backtracked path
        )(ids_flat, *common, trans_t)

    lab_flat = labels.T.reshape(n, 1).astype(jnp.int32)
    loss = pl.pallas_call(
        functools.partial(loss_kernel, t_len=t_len, bsz=bsz),
        out_shape=jax.ShapeDtypeStruct((1, 1), jnp.float32),
        in_specs=[_vmem()] * 12,
        out_specs=_vmem(),
        scratch_shapes=_scratch_common(n),
    )(ids_flat, lab_flat, *common, crf["trans"], trans_t)
    return loss[0, 0]                                                      # torchcrf reduction='sum'


# =============================== parameter init ===============================

def init_params(key):
    ks = jax.random.split(key, 12)

    def unif(k, shape, bound):
        return jax.random.uniform(k, shape, jnp.float32, -bound, bound)

    # TODO(synk): pretrained GoogleNews word2vec rows cannot be loaded in-script;
    #             embedding table is deterministically randomly initialized instead.
    params = {"emb": jax.random.normal(ks[0], (VOCAB, EMBED_DIM), jnp.float32) * 0.1}

    bound = 1.0 / (HID_DIR ** 0.5)
    wih_layers, whh_layers, b_layers = [], [], []
    ki = 1
    for layer in range(NUM_LAYERS):
        d_in = EMBED_DIM if layer == 0 else HIDDEN_DIM
        wih_l = jnp.zeros((d_in, G8), jnp.float32)
        whh_l = jnp.zeros((2 * HID_DIR, G8), jnp.float32)   # block-diagonal [fwd | bwd]
        b_l = jnp.zeros((1, G8), jnp.float32)
        for d in range(2):                                   # 0: forward, 1: backward
            k1, k2, k3, k4 = jax.random.split(ks[ki], 4)
            ki += 1
            w_ih = unif(k1, (4 * HID_DIR, d_in), bound)      # PyTorch layout (4H, D), gates [i,f,g,o]
            w_hh = unif(k2, (4 * HID_DIR, HID_DIR), bound)
            b_ih = unif(k3, (4 * HID_DIR,), bound)
            b_hh = unif(k4, (4 * HID_DIR,), bound)
            c0 = d * G4
            wih_l = wih_l.at[:, c0:c0 + G4].set(
                w_ih.reshape(4, HID_DIR, d_in).transpose(2, 0, 1).reshape(d_in, G4))
            whh_l = whh_l.at[d * HID_DIR:(d + 1) * HID_DIR, c0:c0 + G4].set(
                w_hh.reshape(4, HID_DIR, HID_DIR).transpose(2, 0, 1).reshape(HID_DIR, G4))
            b_l = b_l.at[0, c0:c0 + G4].set(b_ih + b_hh)
        wih_layers.append(wih_l)
        whh_layers.append(whh_l)
        b_layers.append(b_l)
    params["wih"] = jnp.stack(wih_layers)                    # (L, D_in, 128)
    params["whh"] = jnp.stack(whh_layers)                    # (L, 2*HID_DIR, 128)
    params["b"] = jnp.stack(b_layers)                        # (L, 1, 128)

    fc_bound = 1.0 / (HIDDEN_DIM ** 0.5)
    params["fc_w"] = unif(ks[ki], (NUM_CLASSES, HIDDEN_DIM), fc_bound).T   # (H, C)
    params["fc_b"] = unif(ks[ki + 1], (1, NUM_CLASSES), fc_bound)

    params["crf"] = {
        "start": unif(ks[ki + 2], (1, NUM_CLASSES), 0.1),
        "end": unif(ks[ki + 3], (1, NUM_CLASSES), 0.1),
        "trans": unif(ks[ki + 4], (NUM_CLASSES, NUM_CLASSES), 0.1),
    }
    return params


# ==================================== main ====================================

if __name__ == "__main__":
    key = jax.random.PRNGKey(0)
    pkey, ikey, lkey = jax.random.split(key, 3)
    params = init_params(pkey)

    input_ids = jax.random.randint(ikey, (BATCH, SEQ), 0, VOCAB, dtype=jnp.int32)
    labels = jax.random.randint(lkey, (BATCH, SEQ), 0, NUM_CLASSES, dtype=jnp.int32)

    preds = bilstm_crf_forward(params, input_ids)            # CRF Viterbi decode: (B, T) int32
    loss = bilstm_crf_forward(params, input_ids, labels)     # -CRF log-likelihood (scalar)

    jax.block_until_ready((preds, loss))
    print("KERNEL_OK")
</pallas_src>

<mosaic_0001>
module attributes {stable_mosaic.version = 11 : i64} {
  func.func @decode_kernel(%arg0: memref<16x1xi32, #tpu.memory_space<vmem>>, %arg1: memref<16x32xf32, #tpu.memory_space<vmem>>, %arg2: memref<2x32x128xf32, #tpu.memory_space<vmem>>, %arg3: memref<2x32x128xf32, #tpu.memory_space<vmem>>, %arg4: memref<2x1x128xf32, #tpu.memory_space<vmem>>, %arg5: memref<32x8xf32, #tpu.memory_space<vmem>>, %arg6: memref<1x8xf32, #tpu.memory_space<vmem>>, %arg7: memref<1x8xf32, #tpu.memory_space<vmem>>, %arg8: memref<1x8xf32, #tpu.memory_space<vmem>>, %arg9: memref<8x8xf32, #tpu.memory_space<vmem>>, %arg10: memref<2x8xi32, #tpu.memory_space<vmem>>, %arg11: memref<16x128xf32, #tpu.memory_space<vmem>>, %arg12: memref<16x16xf32, #tpu.memory_space<vmem>>, %arg13: memref<16x16xf32, #tpu.memory_space<vmem>>, %arg14: memref<16x8xf32, #tpu.memory_space<vmem>>, %arg15: memref<8x2x8xi32, #tpu.memory_space<vmem>>, %arg16: memref<8x2x1xi32, #tpu.memory_space<vmem>>) attributes {dimension_semantics = [], scalar_prefetch = 0 : i64, scratch_operands = 6 : i64, tpu.core_type = #tpu.core_type<tc>} {
    %c0 = arith.constant 0 : index
    %c0_0 = arith.constant 0 : index
    %0 = vector.load %arg0[%c0, %c0_0] : memref<16x1xi32, #tpu.memory_space<vmem>>, vector<16x1xi32>
    %1 = tpu.iota {dimensions = array<i32: 1>} : vector<16x16xi32>
    %2 = vector.broadcast %0 : vector<16x1xi32> to vector<16x16xi32>
    %3 = arith.cmpi eq, %1, %2 : vector<16x16xi32>
    %4 = arith.extui %3 : vector<16x16xi1> to vector<16x16xi32>
    %5 = arith.sitofp %4 : vector<16x16xi32> to vector<16x16xf32>
    %c0_1 = arith.constant 0 : index
    %c0_2 = arith.constant 0 : index
    %6 = vector.load %arg1[%c0_1, %c0_2] : memref<16x32xf32, #tpu.memory_space<vmem>>, vector<16x32xf32>
    %cst = arith.constant dense<0.000000e+00> : vector<16x32xf32>
    %7 = tpu.matmul %5, %6, %cst {dimension_numbers = #tpu.dot_dimension_numbers<[1], [0], [0], [1], [0, 0, 1, 1], [], []>} : vector<16x16xf32>, vector<16x32xf32>, vector<16x32xf32> -> vector<16x32xf32>
    %c0_3 = arith.constant 0 : index
    %c0_4 = arith.constant 0 : index
    %c0_5 = arith.constant 0 : index
    %8 = vector.load %arg2[%c0_3, %c0_4, %c0_5] : memref<2x32x128xf32, #tpu.memory_space<vmem>>, vector<1x32x128xf32>
    %9 = vector.shape_cast %8 : vector<1x32x128xf32> to vector<32x128xf32>
    %cst_6 = arith.constant dense<0.000000e+00> : vector<16x128xf32>
    %10 = tpu.matmul %7, %9, %cst_6 {dimension_numbers = #tpu.dot_dimension_numbers<[1], [0], [0], [1], [0, 0, 1, 1], [], []>} : vector<16x32xf32>, vector<32x128xf32>, vector<16x128xf32> -> vector<16x128xf32>
    %c0_7 = arith.constant 0 : index
    %c0_8 = arith.constant 0 : index
    %c0_9 = arith.constant 0 : index
    %11 = vector.load %arg4[%c0_7, %c0_8, %c0_9] : memref<2x1x128xf32, #tpu.memory_space<vmem>>, vector<1x1x128xf32>
    %12 = vector.shape_cast %11 : vector<1x1x128xf32> to vector<1x128xf32>
    %13 = vector.broadcast %12 : vector<1x128xf32> to vector<16x128xf32>
    %14 = arith.addf %10, %13 : vector<16x128xf32>
    %c0_10 = arith.constant 0 : index
    %c0_11 = arith.constant 0 : index
    %15 = vector.load %arg11[%c0_10, %c0_11] : memref<16x128xf32, #tpu.memory_space<vmem>>, vector<16x128xf32>
    tpu.vector_store %arg11[%c0_10, %c0_11], %14 {strides = array<i32>} : memref<16x128xf32, #tpu.memory_space<vmem>>, vector<16x128xf32>,
    %c0_12 = arith.constant 0 : index
    %c0_13 = arith.constant 0 : index
    %c0_14 = arith.constant 0 : index
    %16 = vector.load %arg3[%c0_12, %c0_13, %c0_14] : memref<2x32x128xf32, #tpu.memory_space<vmem>>, vector<1x32x128xf32>
    %17 = vector.shape_cast %16 : vector<1x32x128xf32> to vector<32x128xf32>
    %cst_15 = arith.constant 0.000000e+00 : f32
    %18 = vector.broadcast %cst_15 : f32 to vector<2x32xf32>
    %c0_i32 = arith.constant 0 : i32
    %c8_i32 = arith.constant 8 : i32
    %19 = arith.addi %c0_i32, %c8_i32 : i32
    %c1_i32 = arith.constant 1 : i32
    %20:2 = scf.for %arg17 = %c0_i32 to %19 step %c1_i32 iter_args(%arg18 = %18, %arg19 = %18) -> (vector<2x32xf32>, vector<2x32xf32>)  : i32 {
      %c7_i32_89 = arith.constant 7 : i32
      %90 = arith.subi %c7_i32_89, %arg17 : i32
      %cst_90 = arith.constant dense<0.000000e+00> : vector<2x128xf32>
      %91 = tpu.matmul %arg18, %17, %cst_90 {dimension_numbers = #tpu.dot_dimension_numbers<[1], [0], [0], [1], [0, 0, 1, 1], [], []>} : vector<2x32xf32>, vector<32x128xf32>, vector<2x128xf32> -> vector<2x128xf32>
      %c2_i32 = arith.constant 2 : i32
      %92 = arith.muli %arg17, %c2_i32 : i32
      %93 = arith.index_cast %92 : i32 to index
      %c0_91 = arith.constant 0 : index
      %94 = vector.load %arg11[%93, %c0_91] : memref<16x128xf32, #tpu.memory_space<vmem>>, vector<2x128xf32>
      %c2_i32_92 = arith.constant 2 : i32
      %95 = arith.muli %90, %c2_i32_92 : i32
      %96 = arith.index_cast %95 : i32 to index
      %c0_93 = arith.constant 0 : index
      %97 = vector.load %arg11[%96, %c0_93] : memref<16x128xf32, #tpu.memory_space<vmem>>, vector<2x128xf32>
      %98 = vector.extract_strided_slice %94 {offsets = [0, 0], sizes = [2, 64], strides = [1, 1]} : vector<2x128xf32> to vector<2x64xf32>
      %99 = vector.extract_strided_slice %91 {offsets = [0, 0], sizes = [2, 64], strides = [1, 1]} : vector<2x128xf32> to vector<2x64xf32>
      %100 = arith.addf %98, %99 : vector<2x64xf32>
      %101 = vector.extract_strided_slice %97 {offsets = [0, 64], sizes = [2, 64], strides = [1, 1]} : vector<2x128xf32> to vector<2x64xf32>
      %102 = vector.extract_strided_slice %91 {offsets = [0, 64], sizes = [2, 64], strides = [1, 1]} : vector<2x128xf32> to vector<2x64xf32>
      %103 = arith.addf %101, %102 : vector<2x64xf32>
      %104 = vector.extract_strided_slice %arg19 {offsets = [0, 0], sizes = [2, 16], strides = [1, 1]} : vector<2x32xf32> to vector<2x16xf32>
      %105 = vector.extract_strided_slice %100 {offsets = [0, 0], sizes = [2, 16], strides = [1, 1]} : vector<2x64xf32> to vector<2x16xf32>
      %106 = arith.negf %105 : vector<2x16xf32>
      %107 = math.exp %106 : vector<2x16xf32>
      %cst_94 = arith.constant 1.000000e+00 : f32
      %108 = vector.broadcast %cst_94 : f32 to vector<2x16xf32>
      %109 = arith.addf %108, %107 : vector<2x16xf32>
      %110 = arith.divf %108, %109 : vector<2x16xf32>
      %111 = vector.extract_strided_slice %100 {offsets = [0, 16], sizes = [2, 16], strides = [1, 1]} : vector<2x64xf32> to vector<2x16xf32>
      %112 = arith.negf %111 : vector<2x16xf32>
      %113 = math.exp %112 : vector<2x16xf32>
      %cst_95 = arith.constant 1.000000e+00 : f32
      %114 = vector.broadcast %cst_95 : f32 to vector<2x16xf32>
      %115 = arith.addf %114, %113 : vector<2x16xf32>
      %116 = arith.divf %114, %115 : vector<2x16xf32>
      %117 = vector.extract_strided_slice %100 {offsets = [0, 32], sizes = [2, 16], strides = [1, 1]} : vector<2x64xf32> to vector<2x16xf32>
      %118 = math.tanh %117 : vector<2x16xf32>
      %119 = vector.extract_strided_slice %100 {offsets = [0, 48], sizes = [2, 16], strides = [1, 1]} : vector<2x64xf32> to vector<2x16xf32>
      %120 = arith.negf %119 : vector<2x16xf32>
      %121 = math.exp %120 : vector<2x16xf32>
      %cst_96 = arith.constant 1.000000e+00 : f32
      %122 = vector.broadcast %cst_96 : f32 to vector<2x16xf32>
      %123 = arith.addf %122, %121 : vector<2x16xf32>
      %124 = arith.divf %122, %123 : vector<2x16xf32>
      %125 = arith.mulf %116, %104 : vector<2x16xf32>
      %126 = arith.mulf %110, %118 : vector<2x16xf32>
      %127 = arith.addf %125, %126 : vector<2x16xf32>
      %128 = math.tanh %127 : vector<2x16xf32>
      %129 = arith.mulf %124, %128 : vector<2x16xf32>
      %130 = vector.extract_strided_slice %arg19 {offsets = [0, 16], sizes = [2, 16], strides = [1, 1]} : vector<2x32xf32> to vector<2x16xf32>
      %131 = vector.extract_strided_slice %103 {offsets = [0, 0], sizes = [2, 16], strides = [1, 1]} : vector<2x64xf32> to vector<2x16xf32>
      %132 = arith.negf %131 : vector<2x16xf32>
      %133 = math.exp %132 : vector<2x16xf32>
      %cst_97 = arith.constant 1.000000e+00 : f32
      %134 = vector.broadcast %cst_97 : f32 to vector<2x16xf32>
      %135 = arith.addf %134, %133 : vector<2x16xf32>
      %136 = arith.divf %134, %135 : vector<2x16xf32>
      %137 = vector.extract_strided_slice %103 {offsets = [0, 16], sizes = [2, 16], strides = [1, 1]} : vector<2x64xf32> to vector<2x16xf32>
      %138 = arith.negf %137 : vector<2x16xf32>
      %139 = math.exp %138 : vector<2x16xf32>
      %cst_98 = arith.constant 1.000000e+00 : f32
      %140 = vector.broadcast %cst_98 : f32 to vector<2x16xf32>
      %141 = arith.addf %140, %139 : vector<2x16xf32>
      %142 = arith.divf %140, %141 : vector<2x16xf32>
      %143 = vector.extract_strided_slice %103 {offsets = [0, 32], sizes = [2, 16], strides = [1, 1]} : vector<2x64xf32> to vector<2x16xf32>
      %144 = math.tanh %143 : vector<2x16xf32>
      %145 = vector.extract_strided_slice %103 {offsets = [0, 48], sizes = [2, 16], strides = [1, 1]} : vector<2x64xf32> to vector<2x16xf32>
      %146 = arith.negf %145 : vector<2x16xf32>
      %147 = math.exp %146 : vector<2x16xf32>
      %cst_99 = arith.constant 1.000000e+00 : f32
      %148 = vector.broadcast %cst_99 : f32 to vector<2x16xf32>
      %149 = arith.addf %148, %147 : vector<2x16xf32>
      %150 = arith.divf %148, %149 : vector<2x16xf32>
      %151 = arith.mulf %142, %130 : vector<2x16xf32>
      %152 = arith.mulf %136, %144 : vector<2x16xf32>
      %153 = arith.addf %151, %152 : vector<2x16xf32>
      %154 = math.tanh %153 : vector<2x16xf32>
      %155 = arith.mulf %150, %154 : vector<2x16xf32>
      %c2_i32_100 = arith.constant 2 : i32
      %156 = arith.muli %arg17, %c2_i32_100 : i32
      %157 = arith.index_cast %156 : i32 to index
      %c0_101 = arith.constant 0 : index
      %158 = vector.load %arg12[%157, %c0_101] : memref<16x16xf32, #tpu.memory_space<vmem>>, vector<2x16xf32>
      tpu.vector_store %arg12[%157, %c0_101], %129 {strides = array<i32>} : memref<16x16xf32, #tpu.memory_space<vmem>>, vector<2x16xf32>,
      %c2_i32_102 = arith.constant 2 : i32
      %159 = arith.muli %90, %c2_i32_102 : i32
      %160 = arith.index_cast %159 : i32 to index
      %c0_103 = arith.constant 0 : index
      %161 = vector.load %arg13[%160, %c0_103] : memref<16x16xf32, #tpu.memory_space<vmem>>, vector<2x16xf32>
      tpu.vector_store %arg13[%160, %c0_103], %155 {strides = array<i32>} : memref<16x16xf32, #tpu.memory_space<vmem>>, vector<2x16xf32>,
      %162 = tpu.concatenate %129, %155 in 1 : vector<2x16xf32>, vector<2x16xf32> -> vector<2x32xf32>
      %163 = tpu.concatenate %127, %153 in 1 : vector<2x16xf32>, vector<2x16xf32> -> vector<2x32xf32>
      scf.yield %162, %163 : vector<2x32xf32>, vector<2x32xf32>
    }
    %c8_i32_16 = arith.constant 8 : i32
    %c0_17 = arith.constant 0 : index
    %c0_18 = arith.constant 0 : index
    %21 = vector.load %arg12[%c0_17, %c0_18] : memref<16x16xf32, #tpu.memory_space<vmem>>, vector<16x16xf32>
    %c0_19 = arith.constant 0 : index
    %c0_20 = arith.constant 0 : index
    %22 = vector.load %arg13[%c0_19, %c0_20] : memref<16x16xf32, #tpu.memory_space<vmem>>, vector<16x16xf32>
    %23 = tpu.concatenate %21, %22 in 1 : vector<16x16xf32>, vector<16x16xf32> -> vector<16x32xf32>
    %c1 = arith.constant 1 : index
    %c0_21 = arith.constant 0 : index
    %c0_22 = arith.constant 0 : index
    %24 = vector.load %arg2[%c1, %c0_21, %c0_22] : memref<2x32x128xf32, #tpu.memory_space<vmem>>, vector<1x32x128xf32>
    %25 = vector.shape_cast %24 : vector<1x32x128xf32> to vector<32x128xf32>
    %cst_23 = arith.constant dense<0.000000e+00> : vector<16x128xf32>
    %26 = tpu.matmul %23, %25, %cst_23 {dimension_numbers = #tpu.dot_dimension_numbers<[1], [0], [0], [1], [0, 0, 1, 1], [], []>} : vector<16x32xf32>, vector<32x128xf32>, vector<16x128xf32> -> vector<16x128xf32>
    %c1_24 = arith.constant 1 : index
    %c0_25 = arith.constant 0 : index
    %c0_26 = arith.constant 0 : index
    %27 = vector.load %arg4[%c1_24, %c0_25, %c0_26] : memref<2x1x128xf32, #tpu.memory_space<vmem>>, vector<1x1x128xf32>
    %28 = vector.shape_cast %27 : vector<1x1x128xf32> to vector<1x128xf32>
    %29 = vector.broadcast %28 : vector<1x128xf32> to vector<16x128xf32>
    %30 = arith.addf %26, %29 : vector<16x128xf32>
    %c0_27 = arith.constant 0 : index
    %c0_28 = arith.constant 0 : index
    %31 = vector.load %arg11[%c0_27, %c0_28] : memref<16x128xf32, #tpu.memory_space<vmem>>, vector<16x128xf32>
    tpu.vector_store %arg11[%c0_27, %c0_28], %30 {strides = array<i32>} : memref<16x128xf32, #tpu.memory_space<vmem>>, vector<16x128xf32>,
    %c1_29 = arith.constant 1 : index
    %c0_30 = arith.constant 0 : index
    %c0_31 = arith.constant 0 : index
    %32 = vector.load %arg3[%c1_29, %c0_30, %c0_31] : memref<2x32x128xf32, #tpu.memory_space<vmem>>, vector<1x32x128xf32>
    %33 = vector.shape_cast %32 : vector<1x32x128xf32> to vector<32x128xf32>
    %cst_32 = arith.constant 0.000000e+00 : f32
    %34 = vector.broadcast %cst_32 : f32 to vector<2x32xf32>
    %c0_i32_33 = arith.constant 0 : i32
    %c8_i32_34 = arith.constant 8 : i32
    %35 = arith.addi %c0_i32_33, %c8_i32_34 : i32
    %c1_i32_35 = arith.constant 1 : i32
    %36:2 = scf.for %arg17 = %c0_i32_33 to %35 step %c1_i32_35 iter_args(%arg18 = %34, %arg19 = %34) -> (vector<2x32xf32>, vector<2x32xf32>)  : i32 {
      %c7_i32_89 = arith.constant 7 : i32
      %90 = arith.subi %c7_i32_89, %arg17 : i32
      %cst_90 = arith.constant dense<0.000000e+00> : vector<2x128xf32>
      %91 = tpu.matmul %arg18, %33, %cst_90 {dimension_numbers = #tpu.dot_dimension_numbers<[1], [0], [0], [1], [0, 0, 1, 1], [], []>} : vector<2x32xf32>, vector<32x128xf32>, vector<2x128xf32> -> vector<2x128xf32>
      %c2_i32 = arith.constant 2 : i32
      %92 = arith.muli %arg17, %c2_i32 : i32
      %93 = arith.index_cast %92 : i32 to index
      %c0_91 = arith.constant 0 : index
      %94 = vector.load %arg11[%93, %c0_91] : memref<16x128xf32, #tpu.memory_space<vmem>>, vector<2x128xf32>
      %c2_i32_92 = arith.constant 2 : i32
      %95 = arith.muli %90, %c2_i32_92 : i32
      %96 = arith.index_cast %95 : i32 to index
      %c0_93 = arith.constant 0 : index
      %97 = vector.load %arg11[%96, %c0_93] : memref<16x128xf32, #tpu.memory_space<vmem>>, vector<2x128xf32>
      %98 = vector.extract_strided_slice %94 {offsets = [0, 0], sizes = [2, 64], strides = [1, 1]} : vector<2x128xf32> to vector<2x64xf32>
      %99 = vector.extract_strided_slice %91 {offsets = [0, 0], sizes = [2, 64], strides = [1, 1]} : vector<2x128xf32> to vector<2x64xf32>
      %100 = arith.addf %98, %99 : vector<2x64xf32>
      %101 = vector.extract_strided_slice %97 {offsets = [0, 64], sizes = [2, 64], strides = [1, 1]} : vector<2x128xf32> to vector<2x64xf32>
      %102 = vector.extract_strided_slice %91 {offsets = [0, 64], sizes = [2, 64], strides = [1, 1]} : vector<2x128xf32> to vector<2x64xf32>
      %103 = arith.addf %101, %102 : vector<2x64xf32>
      %104 = vector.extract_strided_slice %arg19 {offsets = [0, 0], sizes = [2, 16], strides = [1, 1]} : vector<2x32xf32> to vector<2x16xf32>
      %105 = vector.extract_strided_slice %100 {offsets = [0, 0], sizes = [2, 16], strides = [1, 1]} : vector<2x64xf32> to vector<2x16xf32>
      %106 = arith.negf %105 : vector<2x16xf32>
      %107 = math.exp %106 : vector<2x16xf32>
      %cst_94 = arith.constant 1.000000e+00 : f32
      %108 = vector.broadcast %cst_94 : f32 to vector<2x16xf32>
      %109 = arith.addf %108, %107 : vector<2x16xf32>
      %110 = arith.divf %108, %109 : vector<2x16xf32>
      %111 = vector.extract_strided_slice %100 {offsets = [0, 16], sizes = [2, 16], strides = [1, 1]} : vector<2x64xf32> to vector<2x16xf32>
      %112 = arith.negf %111 : vector<2x16xf32>
      %113 = math.exp %112 : vector<2x16xf32>
      %cst_95 = arith.constant 1.000000e+00 : f32
      %114 = vector.broadcast %cst_95 : f32 to vector<2x16xf32>
      %115 = arith.addf %114, %113 : vector<2x16xf32>
      %116 = arith.divf %114, %115 : vector<2x16xf32>
      %117 = vector.extract_strided_slice %100 {offsets = [0, 32], sizes = [2, 16], strides = [1, 1]} : vector<2x64xf32> to vector<2x16xf32>
      %118 = math.tanh %117 : vector<2x16xf32>
      %119 = vector.extract_strided_slice %100 {offsets = [0, 48], sizes = [2, 16], strides = [1, 1]} : vector<2x64xf32> to vector<2x16xf32>
      %120 = arith.negf %119 : vector<2x16xf32>
      %121 = math.exp %120 : vector<2x16xf32>
      %cst_96 = arith.constant 1.000000e+00 : f32
      %122 = vector.broadcast %cst_96 : f32 to vector<2x16xf32>
      %123 = arith.addf %122, %121 : vector<2x16xf32>
      %124 = arith.divf %122, %123 : vector<2x16xf32>
      %125 = arith.mulf %116, %104 : vector<2x16xf32>
      %126 = arith.mulf %110, %118 : vector<2x16xf32>
      %127 = arith.addf %125, %126 : vector<2x16xf32>
      %128 = math.tanh %127 : vector<2x16xf32>
      %129 = arith.mulf %124, %128 : vector<2x16xf32>
      %130 = vector.extract_strided_slice %arg19 {offsets = [0, 16], sizes = [2, 16], strides = [1, 1]} : vector<2x32xf32> to vector<2x16xf32>
      %131 = vector.extract_strided_slice %103 {offsets = [0, 0], sizes = [2, 16], strides = [1, 1]} : vector<2x64xf32> to vector<2x16xf32>
      %132 = arith.negf %131 : vector<2x16xf32>
      %133 = math.exp %132 : vector<2x16xf32>
      %cst_97 = arith.constant 1.000000e+00 : f32
      %134 = vector.broadcast %cst_97 : f32 to vector<2x16xf32>
      %135 = arith.addf %134, %133 : vector<2x16xf32>
      %136 = arith.divf %134, %135 : vector<2x16xf32>
      %137 = vector.extract_strided_slice %103 {offsets = [0, 16], sizes = [2, 16], strides = [1, 1]} : vector<2x64xf32> to vector<2x16xf32>
      %138 = arith.negf %137 : vector<2x16xf32>
      %139 = math.exp %138 : vector<2x16xf32>
      %cst_98 = arith.constant 1.000000e+00 : f32
      %140 = vector.broadcast %cst_98 : f32 to vector<2x16xf32>
      %141 = arith.addf %140, %139 : vector<2x16xf32>
      %142 = arith.divf %140, %141 : vector<2x16xf32>
      %143 = vector.extract_strided_slice %103 {offsets = [0, 32], sizes = [2, 16], strides = [1, 1]} : vector<2x64xf32> to vector<2x16xf32>
      %144 = math.tanh %143 : vector<2x16xf32>
      %145 = vector.extract_strided_slice %103 {offsets = [0, 48], sizes = [2, 16], strides = [1, 1]} : vector<2x64xf32> to vector<2x16xf32>
      %146 = arith.negf %145 : vector<2x16xf32>
      %147 = math.exp %146 : vector<2x16xf32>
      %cst_99 = arith.constant 1.000000e+00 : f32
      %148 = vector.broadcast %cst_99 : f32 to vector<2x16xf32>
      %149 = arith.addf %148, %147 : vector<2x16xf32>
      %150 = arith.divf %148, %149 : vector<2x16xf32>
      %151 = arith.mulf %142, %130 : vector<2x16xf32>
      %152 = arith.mulf %136, %144 : vector<2x16xf32>
      %153 = arith.addf %151, %152 : vector<2x16xf32>
      %154 = math.tanh %153 : vector<2x16xf32>
      %155 = arith.mulf %150, %154 : vector<2x16xf32>
      %c2_i32_100 = arith.constant 2 : i32
      %156 = arith.muli %arg17, %c2_i32_100 : i32
      %157 = arith.index_cast %156 : i32 to index
      %c0_101 = arith.constant 0 : index
      %158 = vector.load %arg12[%157, %c0_101] : memref<16x16xf32, #tpu.memory_space<vmem>>, vector<2x16xf32>
      tpu.vector_store %arg12[%157, %c0_101], %129 {strides = array<i32>} : memref<16x16xf32, #tpu.memory_space<vmem>>, vector<2x16xf32>,
      %c2_i32_102 = arith.constant 2 : i32
      %159 = arith.muli %90, %c2_i32_102 : i32
      %160 = arith.index_cast %159 : i32 to index
      %c0_103 = arith.constant 0 : index
      %161 = vector.load %arg13[%160, %c0_103] : memref<16x16xf32, #tpu.memory_space<vmem>>, vector<2x16xf32>
      tpu.vector_store %arg13[%160, %c0_103], %155 {strides = array<i32>} : memref<16x16xf32, #tpu.memory_space<vmem>>, vector<2x16xf32>,
      %162 = tpu.concatenate %129, %155 in 1 : vector<2x16xf32>, vector<2x16xf32> -> vector<2x32xf32>
      %163 = tpu.concatenate %127, %153 in 1 : vector<2x16xf32>, vector<2x16xf32> -> vector<2x32xf32>
      scf.yield %162, %163 : vector<2x32xf32>, vector<2x32xf32>
    }
    %c8_i32_36 = arith.constant 8 : i32
    %c0_37 = arith.constant 0 : index
    %c0_38 = arith.constant 0 : index
    %37 = vector.load %arg12[%c0_37, %c0_38] : memref<16x16xf32, #tpu.memory_space<vmem>>, vector<16x16xf32>
    %c0_39 = arith.constant 0 : index
    %c0_40 = arith.constant 0 : index
    %38 = vector.load %arg13[%c0_39, %c0_40] : memref<16x16xf32, #tpu.memory_space<vmem>>, vector<16x16xf32>
    %39 = tpu.concatenate %37, %38 in 1 : vector<16x16xf32>, vector<16x16xf32> -> vector<16x32xf32>
    %c0_41 = arith.constant 0 : index
    %c0_42 = arith.constant 0 : index
    %40 = vector.load %arg5[%c0_41, %c0_42] : memref<32x8xf32, #tpu.memory_space<vmem>>, vector<32x8xf32>
    %cst_43 = arith.constant dense<0.000000e+00> : vector<16x8xf32>
    %41 = tpu.matmul %39, %40, %cst_43 {dimension_numbers = #tpu.dot_dimension_numbers<[1], [0], [0], [1], [0, 0, 1, 1], [], []>} : vector<16x32xf32>, vector<32x8xf32>, vector<16x8xf32> -> vector<16x8xf32>
    %c0_44 = arith.constant 0 : index
    %c0_45 = arith.constant 0 : index
    %42 = vector.load %arg6[%c0_44, %c0_45] : memref<1x8xf32, #tpu.memory_space<vmem>>, vector<1x8xf32>
    %43 = vector.broadcast %42 : vector<1x8xf32> to vector<16x8xf32>
    %44 = arith.addf %41, %43 : vector<16x8xf32>
    %c0_46 = arith.constant 0 : index
    %c0_47 = arith.constant 0 : index
    %45 = vector.load %arg14[%c0_46, %c0_47] : memref<16x8xf32, #tpu.memory_space<vmem>>, vector<16x8xf32>
    tpu.vector_store %arg14[%c0_46, %c0_47], %44 {strides = array<i32>} : memref<16x8xf32, #tpu.memory_space<vmem>>, vector<16x8xf32>,
    %c0_48 = arith.constant 0 : index
    %c0_49 = arith.constant 0 : index
    %46 = vector.load %arg9[%c0_48, %c0_49] : memref<8x8xf32, #tpu.memory_space<vmem>>, vector<8x8xf32>
    %47 = tpu.iota {dimensions = array<i32: 1>} : vector<2x8xi32>
    %48 = tpu.iota {dimensions = array<i32: 2>} : vector<2x8x8xi32>
    %49 = arith.sitofp %48 : vector<2x8x8xi32> to vector<2x8x8xf32>
    %c0_50 = arith.constant 0 : index
    %c0_51 = arith.constant 0 : index
    %50 = vector.load %arg7[%c0_50, %c0_51] : memref<1x8xf32, #tpu.memory_space<vmem>>, vector<1x8xf32>
    %c0_52 = arith.constant 0 : index
    %c0_53 = arith.constant 0 : index
    %51 = vector.load %arg14[%c0_52, %c0_53] : memref<16x8xf32, #tpu.memory_space<vmem>>, vector<2x8xf32>
    %52 = vector.broadcast %50 : vector<1x8xf32> to vector<2x8xf32>
    %53 = arith.addf %52, %51 : vector<2x8xf32>
    %c1_i32_54 = arith.constant 1 : i32
    %c7_i32 = arith.constant 7 : i32
    %54 = arith.addi %c1_i32_54, %c7_i32 : i32
    %c1_i32_55 = arith.constant 1 : i32
    %55 = scf.for %arg17 = %c1_i32_54 to %54 step %c1_i32_55 iter_args(%arg18 = %53) -> (vector<2x8xf32>)  : i32 {
      %c2_i32 = arith.constant 2 : i32
      %90 = arith.muli %arg17, %c2_i32 : i32
      %91 = arith.index_cast %90 : i32 to index
      %c0_89 = arith.constant 0 : index
      %92 = vector.load %arg14[%91, %c0_89] : memref<16x8xf32, #tpu.memory_space<vmem>>, vector<2x8xf32>
      %93 = vector.shape_cast %arg18 : vector<2x8xf32> to vector<2x1x8xf32>
      %94 = vector.shape_cast %46 : vector<8x8xf32> to vector<1x8x8xf32>
      %95 = vector.broadcast %93 : vector<2x1x8xf32> to vector<2x8x8xf32>
      %96 = vector.broadcast %94 : vector<1x8x8xf32> to vector<2x8x8xf32>
      %97 = arith.addf %95, %96 : vector<2x8x8xf32>
      %cst_90 = arith.constant dense<0xFF800000> : vector<2x8xf32>
      %98 = vector.multi_reduction <maximumf>, %97, %cst_90 [2] : vector<2x8x8xf32> to vector<2x8xf32>
      %99 = vector.shape_cast %98 : vector<2x8xf32> to vector<2x8x1xf32>
      %100 = vector.broadcast %99 : vector<2x8x1xf32> to vector<2x8x8xf32>
      %101 = arith.cmpf oeq, %97, %100 : vector<2x8x8xf32>
      %cst_91 = arith.constant 8.000000e+00 : f32
      %102 = vector.broadcast %cst_91 : f32 to vector<2x8x8xf32>
      %103 = arith.select %101, %49, %102 : vector<2x8x8xi1>, vector<2x8x8xf32>
      %cst_92 = arith.constant dense<0x7F800000> : vector<2x8xf32>
      %104 = vector.multi_reduction <minimumf>, %103, %cst_92 [2] : vector<2x8x8xf32> to vector<2x8xf32>
      %105 = arith.fptosi %104 : vector<2x8xf32> to vector<2x8xi32>
      %106 = arith.index_cast %arg17 : i32 to index
      %c0_93 = arith.constant 0 : index
      %c0_94 = arith.constant 0 : index
      %107 = vector.load %arg15[%106, %c0_93, %c0_94] : memref<8x2x8xi32, #tpu.memory_space<vmem>>, vector<1x2x8xi32>
      %108 = vector.shape_cast %107 : vector<1x2x8xi32> to vector<2x8xi32>
      %109 = vector.shape_cast %105 : vector<2x8xi32> to vector<1x2x8xi32>
      tpu.vector_store %arg15[%106, %c0_93, %c0_94], %109 {strides = array<i32>} : memref<8x2x8xi32, #tpu.memory_space<vmem>>, vector<1x2x8xi32>,
      %110 = arith.addf %98, %92 : vector<2x8xf32>
      scf.yield %110 : vector<2x8xf32>
    }
    %c7_i32_56 = arith.constant 7 : i32
    %c0_57 = arith.constant 0 : index
    %c0_58 = arith.constant 0 : index
    %56 = vector.load %arg8[%c0_57, %c0_58] : memref<1x8xf32, #tpu.memory_space<vmem>>, vector<1x8xf32>
    %57 = vector.broadcast %56 : vector<1x8xf32> to vector<2x8xf32>
    %58 = arith.addf %55, %57 : vector<2x8xf32>
    %cst_59 = arith.constant dense<0xFF800000> : vector<2xf32>
    %59 = vector.multi_reduction <maximumf>, %58, %cst_59 [1] : vector<2x8xf32> to vector<2xf32>
    %60 = vector.shape_cast %59 : vector<2xf32> to vector<2x1xf32>
    %61 = vector.broadcast %60 : vector<2x1xf32> to vector<2x8xf32>
    %62 = arith.cmpf oeq, %58, %61 : vector<2x8xf32>
    %c8_i32_60 = arith.constant 8 : i32
    %63 = vector.broadcast %c8_i32_60 : i32 to vector<2x8xi32>
    %64 = arith.select %62, %47, %63 : vector<2x8xi1>, vector<2x8xi32>
    %cst_61 = arith.constant dense<2147483647> : vector<2xi32>
    %65 = vector.multi_reduction <minsi>, %64, %cst_61 [1] : vector<2x8xi32> to vector<2xi32>
    %66 = vector.shape_cast %65 : vector<2xi32> to vector<2x1xi32>
    %c7 = arith.constant 7 : index
    %c0_62 = arith.constant 0 : index
    %c0_63 = arith.constant 0 : index
    %67 = vector.load %arg16[%c7, %c0_62, %c0_63] : memref<8x2x1xi32, #tpu.memory_space<vmem>>, vector<1x2x1xi32>
    %68 = vector.shape_cast %67 : vector<1x2x1xi32> to vector<2x1xi32>
    %69 = vector.shape_cast %66 : vector<2x1xi32> to vector<1x2x1xi32>
    tpu.vector_store %arg16[%c7, %c0_62, %c0_63], %69 {strides = array<i32>} : memref<8x2x1xi32, #tpu.memory_space<vmem>>, vector<1x2x1xi32>,
    %c0_i32_64 = arith.constant 0 : i32
    %c7_i32_65 = arith.constant 7 : i32
    %70 = arith.addi %c0_i32_64, %c7_i32_65 : i32
    %c1_i32_66 = arith.constant 1 : i32
    %71 = scf.for %arg17 = %c0_i32_64 to %70 step %c1_i32_66 iter_args(%arg18 = %66) -> (vector<2x1xi32>)  : i32 {
      %c6_i32 = arith.constant 6 : i32
      %90 = arith.subi %c6_i32, %arg17 : i32
      %c1_i32_89 = arith.constant 1 : i32
      %91 = arith.addi %90, %c1_i32_89 : i32
      %92 = arith.index_cast %91 : i32 to index
      %c0_90 = arith.constant 0 : index
      %c0_91 = arith.constant 0 : index
      %93 = vector.load %arg15[%92, %c0_90, %c0_91] : memref<8x2x8xi32, #tpu.memory_space<vmem>>, vector<1x2x8xi32>
      %94 = vector.shape_cast %93 : vector<1x2x8xi32> to vector<2x8xi32>
      %95 = vector.broadcast %arg18 : vector<2x1xi32> to vector<2x8xi32>
      %96 = arith.cmpi eq, %47, %95 : vector<2x8xi32>
      %c0_i32_92 = arith.constant 0 : i32
      %97 = vector.broadcast %c0_i32_92 : i32 to vector<2x8xi32>
      %98 = arith.select %96, %94, %97 : vector<2x8xi1>, vector<2x8xi32>
      %cst_93 = arith.constant dense<0> : vector<2xi32>
      %99 = vector.multi_reduction <add>, %98, %cst_93 [1] : vector<2x8xi32> to vector<2xi32>
      %100 = vector.shape_cast %99 : vector<2xi32> to vector<2x1xi32>
      %101 = arith.index_cast %90 : i32 to index
      %c0_94 = arith.constant 0 : index
      %c0_95 = arith.constant 0 : index
      %102 = vector.load %arg16[%101, %c0_94, %c0_95] : memref<8x2x1xi32, #tpu.memory_space<vmem>>, vector<1x2x1xi32>
      %103 = vector.shape_cast %102 : vector<1x2x1xi32> to vector<2x1xi32>
      %104 = vector.shape_cast %100 : vector<2x1xi32> to vector<1x2x1xi32>
      tpu.vector_store %arg16[%101, %c0_94, %c0_95], %104 {strides = array<i32>} : memref<8x2x1xi32, #tpu.memory_space<vmem>>, vector<1x2x1xi32>,
      scf.yield %100 : vector<2x1xi32>
    }
    %c7_i32_67 = arith.constant 7 : i32
    %c0_68 = arith.constant 0 : index
    %c0_69 = arith.constant 0 : index
    %c0_70 = arith.constant 0 : index
    %72 = vector.load %arg16[%c0_68, %c0_69, %c0_70] : memref<8x2x1xi32, #tpu.memory_space<vmem>>, vector<1x2x1xi32>
    %73 = vector.shape_cast %72 : vector<1x2x1xi32> to vector<2x1xi32>
    %c1_71 = arith.constant 1 : index
    %c0_72 = arith.constant 0 : index
    %c0_73 = arith.constant 0 : index
    %74 = vector.load %arg16[%c1_71, %c0_72, %c0_73] : memref<8x2x1xi32, #tpu.memory_space<vmem>>, vector<1x2x1xi32>
    %75 = vector.shape_cast %74 : vector<1x2x1xi32> to vector<2x1xi32>
    %c2 = arith.constant 2 : index
    %c0_74 = arith.constant 0 : index
    %c0_75 = arith.constant 0 : index
    %76 = vector.load %arg16[%c2, %c0_74, %c0_75] : memref<8x2x1xi32, #tpu.memory_space<vmem>>, vector<1x2x1xi32>
    %77 = vector.shape_cast %76 : vector<1x2x1xi32> to vector<2x1xi32>
    %c3 = arith.constant 3 : index
    %c0_76 = arith.constant 0 : index
    %c0_77 = arith.constant 0 : index
    %78 = vector.load %arg16[%c3, %c0_76, %c0_77] : memref<8x2x1xi32, #tpu.memory_space<vmem>>, vector<1x2x1xi32>
    %79 = vector.shape_cast %78 : vector<1x2x1xi32> to vector<2x1xi32>
    %c4 = arith.constant 4 : index
    %c0_78 = arith.constant 0 : index
    %c0_79 = arith.constant 0 : index
    %80 = vector.load %arg16[%c4, %c0_78, %c0_79] : memref<8x2x1xi32, #tpu.memory_space<vmem>>, vector<1x2x1xi32>
    %81 = vector.shape_cast %80 : vector<1x2x1xi32> to vector<2x1xi32>
    %c5 = arith.constant 5 : index
    %c0_80 = arith.constant 0 : index
    %c0_81 = arith.constant 0 : index
    %82 = vector.load %arg16[%c5, %c0_80, %c0_81] : memref<8x2x1xi32, #tpu.memory_space<vmem>>, vector<1x2x1xi32>
    %83 = vector.shape_cast %82 : vector<1x2x1xi32> to vector<2x1xi32>
    %c6 = arith.constant 6 : index
    %c0_82 = arith.constant 0 : index
    %c0_83 = arith.constant 0 : index
    %84 = vector.load %arg16[%c6, %c0_82, %c0_83] : memref<8x2x1xi32, #tpu.memory_space<vmem>>, vector<1x2x1xi32>
    %85 = vector.shape_cast %84 : vector<1x2x1xi32> to vector<2x1xi32>
    %c7_84 = arith.constant 7 : index
    %c0_85 = arith.constant 0 : index
    %c0_86 = arith.constant 0 : index
    %86 = vector.load %arg16[%c7_84, %c0_85, %c0_86] : memref<8x2x1xi32, #tpu.memory_space<vmem>>, vector<1x2x1xi32>
    %87 = vector.shape_cast %86 : vector<1x2x1xi32> to vector<2x1xi32>
    %88 = tpu.concatenate %73, %75, %77, %79, %81, %83, %85, %87 in 1 : vector<2x1xi32>, vector<2x1xi32>, vector<2x1xi32>, vector<2x1xi32>, vector<2x1xi32>, vector<2x1xi32>, vector<2x1xi32>, vector<2x1xi32> -> vector<2x8xi32>
    %c0_87 = arith.constant 0 : index
    %c0_88 = arith.constant 0 : index
    %89 = vector.load %arg10[%c0_87, %c0_88] : memref<2x8xi32, #tpu.memory_space<vmem>>, vector<2x8xi32>
    tpu.vector_store %arg10[%c0_87, %c0_88], %88 {strides = array<i32>} : memref<2x8xi32, #tpu.memory_space<vmem>>, vector<2x8xi32>,
    return
  }
}

</mosaic_0001>

<bundles_post_ra>
// kernel: tpu_custom_call.1
= control target key start
LH: loop header
LB: loop body
LE: loop exit
PB: predicated region body
PF: predicated region fallthrough
CT: control target
= control target key end

     0   :  { %15 = vsyncpa [#allocation9], 0  ;;  %s2020_s0 = inlined_call_operand.vmem [shape: s32[16,1], index: 0, kind: input, shape index: {}]   ;;  %s2021_s1 = inlined_call_operand.hbm [shape: f32[16,32], index: 1, kind: input, shape index: {}]   ;;  %s2022_s2 = inlined_call_operand.vmem [shape: f32[2,32,128], index: 2, kind: input, shape index: {}]   ;;  %s2023_s3 = inlined_call_operand.hbm [shape: f32[2,32,128], index: 3, kind: input, shape index: {}]   ;;  %s2024_s4 = inlined_call_operand.hbm [shape: f32[2,1,128], index: 4, kind: input, shape index: {}]   ;;  %s2025_s5 = inlined_call_operand.vmem [shape: f32[32,8], index: 5, kind: input, shape index: {}]   ;;  %s2026_s6 = inlined_call_operand.vmem [shape: f32[1,8], index: 6, kind: input, shape index: {}]   ;;  %s2027_s7 = inlined_call_operand.vmem [shape: f32[1,8], index: 7, kind: input, shape index: {}]   ;;  %s2028_s8 = inlined_call_operand.vmem [shape: f32[1,8], index: 8, kind: input, shape index: {}]   ;;  %s2029_s9 = inlined_call_operand.vmem [shape: f32[8,8], index: 9, kind: input, shape index: {}]   ;;  %s2030_s10 = inlined_call_operand.hbm [shape: s32[2,8], index: 10, kind: output, shape index: {}]  }
   0x1   :  { %16 = vsyncpa [#allocation12], 0 }
   0x2   :  { %17 = vsyncpa [#allocation10], 0  ;;  %s1644_s13 = smov [#allocation11]   ;;  %s1645_s15 = smov [#allocation8]  }
   0x3   :  { %s39_s14 = sshll.u32 %s1644_s13, 4  ;;  %s25_s16 = sshll.u32 %s1645_s15, 4  ;;  %s40_s14 = int_to_ptr.vmem [resolvable:$true] %s39_s14  ;;  %s1735_s16 = int_to_ptr.vmem [resolvable:$true] %s25_s16 }
   0x4   :  { %s1470_s19 = scalar_lea.hbm %s2023_s3, 1024 }
   0x5   :  { %p1471_p0 = scmp.ne.s32.totalorder %s2023_s3, %s1470_s19  ;;  %p1474_p1 = scmp.lt.u32.totalorder %s1470_s19, %s2023_s3 }
   0x7   :  { %p1476_p2 = pnand %p1474_p1, %p1471_p0 }
   0x9   :  { %1479 = shalt.err (!%p1476_p2)
}
   0xa   :  { %s1480_s24 = scalar_lea.vmem %s40_s14, 1024  ;;  %p1485_p4 = scmp.lt.s32.totalorder %s40_s14, %s40_s14 }
   0xb   :  { %p1481_p3 = scmp.ne.s32.totalorder %s40_s14, %s1480_s24  ;;  %p1486_p5 = scmp.lt.s32.totalorder %s1480_s24, %s1480_s24 }
   0xd   :  { %p1487_p6 = por %p1486_p5, %p1485_p4 }
   0xf   :  { %p1488_p7 = pnand %p1487_p6, %p1481_p3 }
  0x11   :  { %1491 = shalt.err (!%p1488_p7)
}
  0x12   :  { %s1646_s25 = smov 128   ;;  %s1647_s26 = smov 8  }
  0x13   :  { %45 = dma.hbm_to_vmem [thread:$0]  %s2023_s3, 1024, %s40_s14, [#allocation12], %s1646_s25, %s1646_s25, %s1647_s26  }
  0x14   :  { %s1492_s11 = scalar_lea.hbm %s2021_s1, 256 }
  0x15   :  { %p1493_p8 = scmp.ne.s32.totalorder %s2021_s1, %s1492_s11  ;;  %p1496_p9 = scmp.lt.u32.totalorder %s1492_s11, %s2021_s1 }
  0x17   :  { %p1498_p10 = pnand %p1496_p9, %p1493_p8 }
  0x19   :  { %1501 = shalt.err (!%p1498_p10)
}
  0x1a   :  { %s1502_s18 = scalar_lea.vmem %s1735_s16, 256  ;;  %p1507_p12 = scmp.lt.s32.totalorder %s1735_s16, %s1735_s16 }
  0x1b   :  { %p1503_p11 = scmp.ne.s32.totalorder %s1735_s16, %s1502_s18  ;;  %p1508_p13 = scmp.lt.s32.totalorder %s1502_s18, %s1502_s18 }
  0x1d   :  { %p1509_p0 = por %p1508_p13, %p1507_p12 }
  0x1f   :  { %p1510_p1 = pnand %p1509_p0, %p1503_p11 }
  0x21   :  { %1513 = shalt.err (!%p1510_p1)
}
  0x22   :  { %31 = dma.hbm_to_vmem [thread:$0]  %s2021_s1, 256, %s1735_s16, [#allocation9], %s1646_s25, %s1646_s25, %s1647_s26  }
  0x23   :  { %s1648_s19 = smov [#allocation13]   ;;  %s1514_s23 = scalar_lea.hbm %s2024_s4, 32 }
  0x24   :  { %s51_s20 = sshll.u32 %s1648_s19, 4  ;;  %p1515_p2 = scmp.ne.s32.totalorder %s2024_s4, %s1514_s23  ;;  %s52_s20 = int_to_ptr.vmem [resolvable:$true] %s51_s20 }
  0x25   :  { %p1518_p3 = scmp.lt.u32.totalorder %s1514_s23, %s2024_s4 }
  0x27   :  { %p1520_p4 = pnand %p1518_p3, %p1515_p2 }
  0x29   :  { %1523 = shalt.err (!%p1520_p4)
}
  0x2a   :  { %s1524_s30 = scalar_lea.vmem %s52_s20, 32  ;;  %p1529_p6 = scmp.lt.s32.totalorder %s52_s20, %s52_s20 }
  0x2b   :  { %p1525_p5 = scmp.ne.s32.totalorder %s52_s20, %s1524_s30  ;;  %p1530_p7 = scmp.lt.s32.totalorder %s1524_s30, %s1524_s30 }
  0x2d   :  { %p1531_p8 = por %p1530_p7, %p1529_p6 }
  0x2f   :  { %p1532_p9 = pnand %p1531_p8, %p1525_p5 }
  0x31   :  { %1535 = shalt.err (!%p1532_p9)
}
  0x32   :  { %s1649_s1 = smov 16   ;;  %s1650_s16 = smov 1  }
  0x33   :  { %57 = dma.hbm_to_vmem [thread:$0]  %s2024_s4, 32, %s52_s20, [#allocation12], %s1649_s1, %s1649_s1, %s1650_s16  }
  0x34   :  { %1598 = dma.done.wait [#allocation9], 256  }
  0x35   :  { %1599 = vsyncadd [#allocation9], 4294967040 }
  0x36   :  { %1600 = dma.done.wait [#allocation12], 1056  }
  0x37   :  { %1601 = vsyncadd [#allocation12], 4294966240  ;;  %v1651_v0 = vmov 0   ;;  %v1781_v1 = vld [vmem:[#allocation11] sm:$0xff]  ;;  %v1783_v2 = vld [vmem:[#allocation11 + $0x8] sm:$0xff]  ;;  %v79_v16 = vlaneseq  ;;  %vm95_vm0 = vcmask 130048  }
  0x38   :  { %1435 = vset.pattern.permute.xlu0 %v1651_v0  ;;  %v1785_v3 = vld [vmem:[#allocation11 + $0x10] sm:$0xff]  ;;  %v1787_v4 = vld [vmem:[#allocation11 + $0x18] sm:$0xff]  ;;  %v77_v5 = vld [vmem:[%s2020_s0] sm:$0xff]  ;;  %v1652_v19 = vmov 0.0   ;;  %vm188_vm3 = vcmask 261120   ;;  %v1816_v30 = vmov 0.0  }
  0x39   :  { %82 = vperm.xlu0 %1435, %v77_v5   ;;  %v93_v6 = vld [vmem:[#allocation8] sm:$0xff]  ;;  %v94_v7 = vld [vmem:[#allocation8 + $0x8] sm:$0xff]  ;;  %v177_v10 = vld [vmem:[%s2022_s2] sm:$0xff]  ;;  %v1808_v17 = vand.u32 127, %v79_v16  ;;  %v1818_v31 = vmov 0.0  }
  0x3a   :  { %v78_v8 = vld [vmem:[%s2020_s0 + $0x8] sm:$0xff]  ;;  %v1275_v9 = vpack.c.bf16 %v94_v7, %v93_v6  ;;  %v179_v12 = vld [vmem:[%s2022_s2 + $0x10] sm:$0xff]  ;;  %v180_v14 = vld [vmem:[%s2022_s2 + $0x18] sm:$0xff]  ;;  %s1820_s0 = smov 0  }
  0x3b   :  { %v178_v11 = vld [vmem:[%s2022_s2 + $0x8] sm:$0xff]  ;;  %v1283_v15 = vpack.c.bf16 %v180_v14, %v179_v12  ;;  %v1153_v25 = vld [vmem:[#allocation13] ss:$0 sm:$0xff] }
  0x3c   :  { %1276 = vmatprep.subr.bf16.mxu0 %v1275_v9  ;;  %v1279_v13 = vpack.c.bf16 %v178_v11, %v177_v10 }
  0x3d   :  { %85 = vperm.xlu0 %1435, %v78_v8   ;;  %1278 = vmatpush3.bf16.msra.mxu0 %v1275_v9 }
  0x3e   :  { %1280 = vmatprep.subr.bf16.mxu1 %v1279_v13 }
  0x3f   :  { %1282 = vmatpush3.bf16.msra.mxu1 %v1279_v13 }
  0x40   :  { %1284 = vmatprep.subr.bf16.mxu1 %v1283_v15 }
  0x43   :  { %1286 = vmatpush3.bf16.msra.mxu1 %v1283_v15 }
  0xb8   :  { %v83_v18 = vpop.permute.xlu0 %82 }
  0xb9   :  { %vm87_vm1 = vcmp.eq.s32.totalorder %v1808_v17, %v83_v18 }
  0xba   :  { %v1149_v20 = vsel %vm87_vm1, 1.0, %v1652_v19 }
  0xbb   :  { %1217 = vmatprep.mubr.msk.f32.mxu0 %vm95_vm0, %v1149_v20 }
  0xbc   :  { %v86_v21 = vpop.permute.xlu0 %85 }
  0xbd   :  { %vm88_vm2 = vcmp.eq.s32.totalorder %v1808_v17, %v86_v21 }
  0xbe   :  { %v1150_v22 = vsel %vm88_vm2, 1.0, %v1652_v19 }
  0xbf   :  { %1218 = vmatmul.mubr.msk.f32.vlgmr.msra.gmra.mrb[0].mxu0 %vm95_vm0, %v1150_v22 }
 0x192   :  { %v1219_v23 = vpop.f32.mrb[0].mxu0 }
 0x193   :  { %v168_v24 = vpop.f32.mrb[1].mxu0 }
 0x194   :  { %1228 = vmatprep.mubr.msk.f32.mxu1 %vm188_vm3, %v168_v24 }
 0x195   :  { %1229 = vmatmul.mubr.msk.f32.vlgmr.msra.gmra.mrb[0].mxu1 %vm188_vm3, %v1219_v23 }
 0x268   :  { %v1230_v26 = vpop.f32.mrb[0].mxu1 }
 0x269   :  { %v267_v27 = vadd.f32 %v1230_v26, %v1153_v25  ;;  %v261_v28 = vpop.f32.mrb[1].mxu1 }
 0x26a   :  { %v262_v29 = vadd.f32 %v1153_v25, %v261_v28 }
 0x26b   :  { %271 = vst [vmem:[#allocation2 + $0x8] sm:$0xff] %v267_v27 }
 0x26c   :  { %270 = vst [vmem:[#allocation2] sm:$0xff] %v262_v29 }
 0x26d LB: > { %v1288_v32 = vpack.c.bf16 %v1783_v2, %v1781_v1  ;;  %v1653_v33 = vmov 0.0|0.0   ;;  %v1291_v34 = vpack.c.bf16 %v1787_v4, %v1785_v3  ;;  %vm1654_vm4 = vmmov 0   ;;  %s1656_s22 = smov 16   ;;  %s1657_s23 = smov 64   ;;  %s1614_s0 = sphi %s1820_s0, %s281_s0   ;;  %v1610_v31 = vphi %v1818_v31, %v437_v31   ;;  %v1606_v30 = vphi %v1816_v30, %v446_v30  }
 0x26e   : > { %1287 = vmatprep.subr.bf16.mxu0 %v1653_v33  ;;  %v1655_v35 = vmov 0.0   ;;  %374 = vrot.lane.b32.xlu1 %v1606_v30, %s1656_s22  ;;  %s284_s24 = ssub.s32 7, %s1614_s0  ;;  %s1157_s27 = sshll.u32 %s1614_s0, 1  ;;  %vm426_vm5 = vcmask 123904  }
 0x26f   : > { %1289 = vmatpush3.bf16.msra.mxu0 %v1288_v32  ;;  %1239 = vmatprep.mubr.msk.f32.mxu0 %vm1654_vm4, %v1655_v35  ;;  %s1836_s28 = sshll.u32 %s284_s24, 1  ;;  %s359_s29 = scalar_lea.vmem [#allocation2], %s1157_s27 }
 0x270   : > { %1290 = vmatprep.subr.bf16.mxu0 %v1653_v33  ;;  %s362_s30 = scalar_lea.vmem [#allocation2], %s1836_s28  ;;  %s1658_s25 = smov 96  }
 0x271   : > { %s1659_s26 = smov 32   ;;  %s1660_s11 = smov 80  }
 0x272   : > { %401 = vrot.lane.b32.xlu1 %v1606_v30, %s1657_s23  ;;  %s1661_s12 = smov 112   ;;  %s425_s4 = scalar_lea.vmem [#allocation3], %s1157_s27 }
 0x273   : > { %1292 = vmatpush3.bf16.msra.mxu0 %v1291_v34  ;;  %v360_v36 = vld [vmem:[%s359_s29] sm:$0x3]  ;;  %s432_s13 = scalar_lea.vmem [#allocation4], %s1836_s28  ;;  %s281_s0 = sadd.s32 1, %s1614_s0  }
 0x274   : > { %v363_v38 = vld [vmem:[%s362_s30] sm:$0x3]  ;;  %p278_p10 = scmp.ge.s32.totalorder %s281_s0, 8  }
 0x275   :  { %v1161_v18 = vld [vmem:[%s2022_s2 + $0x20] sm:$0xff] (%p278_p10)  ;;  %v1162_v19 = vld [vmem:[%s2022_s2 + $0x28] sm:$0xff] (%p278_p10)  ;;  %v1163_v20 = vld [vmem:[%s2022_s2 + $0x30] sm:$0xff] (%p278_p10) }
 0x276   : > { %1240 = vmatmul.mubr.msk.f32.vlgmr.msra.gmra.mrb[0].mxu0 %vm188_vm3, %v1610_v31  ;;  %v1164_v21 = vld [vmem:[%s2022_s2 + $0x38] sm:$0xff] (%p278_p10)  ;;  %v1293_v1 = vpack.c.bf16 (%p278_p10), %v1162_v19, %v1161_v18  ;;  %v1879_v28 = vld [vmem:[#allocation11 + $0x28] sm:$0xff] (%p278_p10)  ;;  %v1881_v29 = vld [vmem:[#allocation11 + $0x30] sm:$0xff] (%p278_p10)  ;;  %s1889_s2 = smov (%p278_p10), 0  }
 0x277   :  { %v1297_v2 = vpack.c.bf16 (%p278_p10), %v1164_v21, %v1163_v20  ;;  %v1877_v27 = vld [vmem:[#allocation11 + $0x20] sm:$0xff] (%p278_p10) }
 0x278   :  { %1294 = vmatprep.subr.bf16.mxu0 (%p278_p10), %v1293_v1 }
 0x279   :  { %1296 = vmatpush3.bf16.msra.mxu0 (%p278_p10), %v1293_v1 }
 0x27a   :  { %1298 = vmatprep.subr.bf16.mxu0 (%p278_p10), %v1297_v2 }
 0x27d   :  { %1300 = vmatpush3.bf16.msra.mxu0 (%p278_p10), %v1297_v2 }
 0x2e0   : > { %v375_v56 = vpop.permute.xlu1 %374 }
 0x2e4   : > { %v402_v58 = vpop.permute.xlu1 %401 }
 0x349   : > { %v354_v37 = vpop.f32.mrb[0].mxu0 }
 0x34a   : > { %v364_v39 = vadd.f32 %v360_v36, %v354_v37  ;;  %v1241_v40 = vpop.f32.mrb[1].mxu0  ;;  %v365_v41 = vadd.f32 %v363_v38, %v354_v37  ;;  %v1885_v36 = vmov (%p278_p10), 0.0   ;;  %v1887_v37 = vmov (%p278_p10), 0.0  }
 0x34c   : > { %1436 = vtanh.f32 %v364_v39  ;;  %v1159_v44 = vmul.f32 -1.442695, %v364_v39  ;;  %v1160_v45 = vmul.f32 -1.442695, %v365_v41 }
 0x34d   : > { %1438 = vtanh.f32 %v365_v41 }
 0x34e   : > { %1440 = vpow2.f32 %v1159_v44 }
 0x34f   : > { %1442 = vpow2.f32 %v1160_v45 }
 0x356   : > { %v1437_v42 = vpop.eup %1436 }
 0x357   : > { %379 = vrot.lane.b32.xlu0 %v1437_v42, %s1658_s25  ;;  %v1439_v43 = vpop.eup %1438 }
 0x358   : > { %v1441_v46 = vpop.eup %1440 }
 0x359   : > { %v369_v47 = vadd.f32 1.0, %v1441_v46  ;;  %v1443_v48 = vpop.eup %1442 }
 0x35a   : > { %v397_v49 = vadd.f32 1.0, %v1443_v48 }
 0x35b   : > { %406 = vrot.lane.b32.xlu0 %v1439_v43, %s1658_s25  ;;  %1444 = vrcp.f32 %v369_v47 }
 0x35c   : > { %1446 = vrcp.f32 %v397_v49 }
 0x365   : > { %v1445_v50 = vpop.eup %1444 }
 0x366   : > { %v1447_v53 = vpop.eup %1446  ;;  %v377_v57 = vmul.f32 %v1445_v50, %v375_v56 }
 0x367   : > { %v404_v61 = vmul.f32 %v1447_v53, %v402_v58 }
 0x3c9   : > { %v380_v51 = vpop.permute.xlu0 %379 }
 0x3ca   : > { %v382_v52 = vmul.f32 %v1445_v50, %v380_v51 }
 0x3cc   : > { %384 = vrot.lane.b32.xlu0 %v382_v52, %s1656_s22 }
 0x3cd   : > { %v407_v54 = vpop.permute.xlu0 %406 }
 0x3ce   : > { %v409_v55 = vmul.f32 %v1447_v53, %v407_v54 }
 0x3d0   : > { %411 = vrot.lane.b32.xlu1 %v409_v55, %s1656_s22 }
 0x43e   : > { %v385_v59 = vpop.permute.xlu0 %384 }
 0x43f   : > { %v387_v60 = vadd.f32 %v385_v59, %v377_v57 }
 0x441   : > { %1448 = vtanh.f32 %v387_v60 }
 0x442   : > { %v412_v62 = vpop.permute.xlu1 %411 }
 0x443   : > { %v414_v63 = vadd.f32 %v412_v62, %v404_v61 }
 0x445   : > { %1450 = vtanh.f32 %v414_v63 }
 0x44b   : > { %v1449_v0 = vpop.eup %1448 }
 0x44c   : > { %390 = vrot.lane.b32.xlu0 %v1449_v0, %s1659_s26 }
 0x44f   : > { %v1451_v5 = vpop.eup %1450 }
 0x450   : > { %417 = vrot.lane.b32.xlu1 %v1451_v5, %s1659_s26 }
 0x4be   : > { %v391_v6 = vpop.permute.xlu0 %390 }
 0x4bf   : > { %v393_v7 = vmul.f32 %v1445_v50, %v391_v6 }
 0x4c1   : > { %422 = vrot.lane.b32.xlu0 %v393_v7, %s1660_s11 }
 0x4c2   : > { %v418_v8 = vpop.permute.xlu1 %417 }
 0x4c3   : > { %v420_v9 = vmul.f32 %v1447_v53, %v418_v8 }
 0x4c5   : > { %434 = vrot.lane.b32.xlu0 %v420_v9, %s1659_s26  ;;  %429 = vrot.lane.b32.xlu1 %v420_v9, %s1656_s22 }
 0x4c9   : > { %443 = vrot.lane.b32.xlu0 %v414_v63, %s1657_s23  ;;  %439 = vrot.lane.b32.xlu1 %v387_v60, %s1661_s12 }
 0x533   : > { %v423_v10 = vpop.permute.xlu0 %422 }
 0x534   : > { %427 = vst.msk [vmem:[%s425_s4] sm:$0x3] %vm426_vm5, %v423_v10 }
 0x536   :  { %280 = sbr.rel (!%p278_p10) target bundleno = 621 (0x26d), region = 122 }
 0x537   : > { %v435_v11 = vpop.permute.xlu0 %434  ;;  %v430_v12 = vpop.permute.xlu1 %429 }
 0x538   : > { %v437_v31 = vsel %vm95_vm0, %v423_v10, %v435_v11   ;;  %433 = vst.msk [vmem:[%s432_s13] sm:$0x3] %vm426_vm5, %v430_v12 }
 0x539   :  { %v1165_v31 = vld [vmem:[#allocation13 + $0x1] ss:$0 sm:$0xff] (%p278_p10) }
 0x53b   : > { %v444_v13 = vpop.permute.xlu0 %443  ;;  %v440_v14 = vpop.permute.xlu1 %439  ;;  %v447_v3 = vld [vmem:[#allocation3] sm:$0xff] (%p278_p10)  ;;  %v448_v24 = vld [vmem:[#allocation3 + $0x8] sm:$0xff] (%p278_p10) }
 0x53c   : > { %v446_v30 = vsel %vm95_vm0, %v440_v14, %v444_v13  }
 0x53d   :  { %v1883_v30 = vld [vmem:[#allocation11 + $0x38] sm:$0xff] }
 0x53f   :  { %v449_v15 = vld [vmem:[#allocation4] sm:$0xff]  ;;  %v450_v22 = vld [vmem:[#allocation4 + $0x8] sm:$0xff] }
 0x540   :  { %453 = vrot.lane.b32.xlu0 %v449_v15, %s1649_s1 }
 0x544   :  { %455 = vrot.lane.b32.xlu0 %v450_v22, %s1649_s1 }
 0x5b2   :  { %v454_v4 = vpop.permute.xlu0 %453 }
 0x5b3   :  { %v459_v23 = vsel %vm95_vm0, %v447_v3, %v454_v4 }
 0x5b4   :  { %1250 = vmatprep.mubr.msk.f32.mxu0 %vm188_vm3, %v459_v23 }
 0x5b6   :  { %v456_v25 = vpop.permute.xlu0 %455 }
 0x5b7   :  { %v460_v26 = vsel %vm95_vm0, %v448_v24, %v456_v25 }
 0x5b8   :  { %1251 = vmatmul.mubr.msk.f32.vlgmr.msra.gmra.mrb[0].mxu0 %vm188_vm3, %v460_v26 }
 0x68b   :  { %v1252_v32 = vpop.f32.mrb[0].mxu0 }
 0x68c   :  { %v552_v33 = vadd.f32 %v1252_v32, %v1165_v31  ;;  %v546_v34 = vpop.f32.mrb[1].mxu0 }
 0x68d   :  { %v547_v35 = vadd.f32 %v1165_v31, %v546_v34 }
 0x68e   :  { %556 = vst [vmem:[#allocation2 + $0x8] sm:$0xff] %v552_v33 }
 0x68f   :  { %555 = vst [vmem:[#allocation2] sm:$0xff] %v547_v35 }
 0x690 LB: > { %v1302_v38 = vpack.c.bf16 %v1879_v28, %v1877_v27  ;;  %v1662_v39 = vmov 0.0|0.0   ;;  %v1305_v40 = vpack.c.bf16 %v1883_v30, %v1881_v29  ;;  %vm1663_vm6 = vmmov 0   ;;  %s1665_s0 = smov 16   ;;  %s1666_s22 = smov 64   ;;  %s1626_s2 = sphi %s1889_s2, %s567_s2   ;;  %v1622_v37 = vphi %v1887_v37, %v723_v37   ;;  %v1618_v36 = vphi %v1885_v36, %v732_v36  }
 0x691   : > { %1301 = vmatprep.subr.bf16.mxu0 %v1662_v39  ;;  %v1664_v41 = vmov 0.0   ;;  %660 = vrot.lane.b32.xlu1 %v1618_v36, %s1665_s0  ;;  %s570_s23 = ssub.s32 7, %s1626_s2  ;;  %s1169_s24 = sshll.u32 %s1626_s2, 1 }
 0x692   : > { %1303 = vmatpush3.bf16.msra.mxu0 %v1302_v38  ;;  %1261 = vmatprep.mubr.msk.f32.mxu0 %vm1663_vm6, %v1664_v41  ;;  %s1905_s27 = sshll.u32 %s570_s23, 1  ;;  %s645_s28 = scalar_lea.vmem [#allocation2], %s1169_s24 }
 0x693   : > { %1304 = vmatprep.subr.bf16.mxu0 %v1662_v39  ;;  %s648_s29 = scalar_lea.vmem [#allocation2], %s1905_s27  ;;  %s1667_s30 = smov 96  }
 0x694   : > { %s1668_s25 = smov 32   ;;  %s1669_s26 = smov 80  }
 0x695   : > { %687 = vrot.lane.b32.xlu1 %v1618_v36, %s1666_s22  ;;  %s1670_s11 = smov 112   ;;  %s711_s12 = scalar_lea.vmem [#allocation3], %s1169_s24 }
 0x696   : > { %1306 = vmatpush3.bf16.msra.mxu0 %v1305_v40  ;;  %v646_v42 = vld [vmem:[%s645_s28] sm:$0x3]  ;;  %s718_s4 = scalar_lea.vmem [#allocation4], %s1905_s27  ;;  %s567_s2 = sadd.s32 1, %s1626_s2  }
 0x697   : > { %v649_v44 = vld [vmem:[%s648_s29] sm:$0x3]  ;;  %p564_p11 = scmp.ge.s32.totalorder %s567_s2, 8  }
 0x698   :  { %v747_v2 = vld [vmem:[%s2025_s5] sm:$0xff] (%p564_p11)  ;;  %v748_v3 = vld [vmem:[%s2025_s5 + $0x8] sm:$0xff] (%p564_p11)  ;;  %v749_v4 = vld [vmem:[%s2025_s5 + $0x10] sm:$0xff] (%p564_p11)  ;;  %v843_v34 = vcvt.s32.f32 (%p564_p11), %v1808_v17  ;;  %vm839_vm7 = vcmask (%p564_p11), 64512  }
 0x699   : > { %1262 = vmatmul.mubr.msk.f32.vlgmr.msra.gmra.mrb[0].mxu0 %vm188_vm3, %v1622_v37  ;;  %v750_v23 = vld [vmem:[%s2025_s5 + $0x18] sm:$0xff] (%p564_p11)  ;;  %v1307_v25 = vpack.c.bf16 (%p564_p11), %v748_v3, %v747_v2  ;;  %v1949_v33 = vld [vmem:[%s2029_s9] sm:$0xff] (%p564_p11)  ;;  %s1962_s9 = smov (%p564_p11), 1  }
 0x69a   :  { %v1311_v26 = vpack.c.bf16 (%p564_p11), %v750_v23, %v749_v4  ;;  %v1173_v35 = vld [vmem:[%s2026_s6] ss:$0 sm:$0xff] (%p564_p11) }
 0x69b   :  { %1308 = vmatprep.subr.bf16.mxu0 (%p564_p11), %v1307_v25  ;;  %v1176_v40 = vld [vmem:[%s2027_s7] ss:$0 sm:$0xff] (%p564_p11) }
 0x69c   :  { %1310 = vmatpush3.bf16.msra.mxu0 (%p564_p11), %v1307_v25 }
 0x69d   :  { %1312 = vmatprep.subr.bf16.mxu0 (%p564_p11), %v1311_v26 }
 0x6a0   :  { %1314 = vmatpush3.bf16.msra.mxu0 (%p564_p11), %v1311_v26 }
 0x703   : > { %v661_v62 = vpop.permute.xlu1 %660 }
 0x707   : > { %v688_v0 = vpop.permute.xlu1 %687 }
 0x76c   : > { %v640_v43 = vpop.f32.mrb[0].mxu0 }
 0x76d   : > { %v650_v45 = vadd.f32 %v646_v42, %v640_v43  ;;  %v1263_v46 = vpop.f32.mrb[1].mxu0  ;;  %v651_v47 = vadd.f32 %v649_v44, %v640_v43 }
 0x76f   : > { %1452 = vtanh.f32 %v650_v45  ;;  %v1171_v50 = vmul.f32 -1.442695, %v650_v45  ;;  %v1172_v51 = vmul.f32 -1.442695, %v651_v47 }
 0x770   : > { %1454 = vtanh.f32 %v651_v47 }
 0x771   : > { %1456 = vpow2.f32 %v1171_v50 }
 0x772   : > { %1458 = vpow2.f32 %v1172_v51 }
 0x779   : > { %v1453_v48 = vpop.eup %1452 }
 0x77a   : > { %665 = vrot.lane.b32.xlu0 %v1453_v48, %s1667_s30  ;;  %v1455_v49 = vpop.eup %1454 }
 0x77b   : > { %v1457_v52 = vpop.eup %1456 }
 0x77c   : > { %v655_v53 = vadd.f32 1.0, %v1457_v52  ;;  %v1459_v54 = vpop.eup %1458 }
 0x77d   : > { %v683_v55 = vadd.f32 1.0, %v1459_v54 }
 0x77e   : > { %692 = vrot.lane.b32.xlu0 %v1455_v49, %s1667_s30  ;;  %1460 = vrcp.f32 %v655_v53 }
 0x77f   : > { %1462 = vrcp.f32 %v683_v55 }
 0x788   : > { %v1461_v56 = vpop.eup %1460 }
 0x789   : > { %v1463_v59 = vpop.eup %1462  ;;  %v663_v63 = vmul.f32 %v1461_v56, %v661_v62 }
 0x78a   : > { %v690_v7 = vmul.f32 %v1463_v59, %v688_v0 }
 0x7ec   : > { %v666_v57 = vpop.permute.xlu0 %665 }
 0x7ed   : > { %v668_v58 = vmul.f32 %v1461_v56, %v666_v57 }
 0x7ef   : > { %670 = vrot.lane.b32.xlu0 %v668_v58, %s1665_s0 }
 0x7f0   : > { %v693_v60 = vpop.permute.xlu0 %692 }
 0x7f1   : > { %v695_v61 = vmul.f32 %v1463_v59, %v693_v60 }
 0x7f3   : > { %697 = vrot.lane.b32.xlu1 %v695_v61, %s1665_s0 }
 0x861   : > { %v671_v5 = vpop.permute.xlu0 %670 }
 0x862   : > { %v673_v6 = vadd.f32 %v671_v5, %v663_v63 }
 0x864   : > { %1464 = vtanh.f32 %v673_v6 }
 0x865   : > { %v698_v8 = vpop.permute.xlu1 %697 }
 0x866   : > { %v700_v9 = vadd.f32 %v698_v8, %v690_v7 }
 0x868   : > { %1466 = vtanh.f32 %v700_v9 }
 0x86e   : > { %v1465_v10 = vpop.eup %1464 }
 0x86f   : > { %676 = vrot.lane.b32.xlu0 %v1465_v10, %s1668_s25 }
 0x872   : > { %v1467_v11 = vpop.eup %1466 }
 0x873   : > { %703 = vrot.lane.b32.xlu1 %v1467_v11, %s1668_s25 }
 0x8e1   : > { %v677_v12 = vpop.permute.xlu0 %676 }
 0x8e2   : > { %v679_v13 = vmul.f32 %v1461_v56, %v677_v12 }
 0x8e4   : > { %708 = vrot.lane.b32.xlu0 %v679_v13, %s1669_s26 }
 0x8e5   : > { %v704_v14 = vpop.permute.xlu1 %703 }
 0x8e6   : > { %v706_v15 = vmul.f32 %v1463_v59, %v704_v14 }
 0x8e8   : > { %720 = vrot.lane.b32.xlu0 %v706_v15, %s1668_s25  ;;  %715 = vrot.lane.b32.xlu1 %v706_v15, %s1665_s0 }
 0x8ec   : > { %729 = vrot.lane.b32.xlu0 %v700_v9, %s1666_s22  ;;  %725 = vrot.lane.b32.xlu1 %v673_v6, %s1670_s11 }
 0x956   : > { %v709_v18 = vpop.permute.xlu0 %708 }
 0x957   : > { %713 = vst.msk [vmem:[%s711_s12] sm:$0x3] %vm426_vm5, %v709_v18 }
 0x959   :  { %566 = sbr.rel (!%p564_p11) target bundleno = 1680 (0x690), region = 133 }
 0x95a   : > { %v721_v19 = vpop.permute.xlu0 %720  ;;  %v716_v20 = vpop.permute.xlu1 %715 }
 0x95b   : > { %v723_v37 = vsel %vm95_vm0, %v709_v18, %v721_v19   ;;  %719 = vst.msk [vmem:[%s718_s4] sm:$0x3] %vm426_vm5, %v716_v20 }
 0x95e   : > { %v730_v21 = vpop.permute.xlu0 %729  ;;  %v726_v22 = vpop.permute.xlu1 %725  ;;  %v733_v27 = vld [vmem:[#allocation3] sm:$0xff] (%p564_p11)  ;;  %v734_v30 = vld [vmem:[#allocation3 + $0x8] sm:$0xff] (%p564_p11) }
 0x95f   : > { %v732_v36 = vsel %vm95_vm0, %v726_v22, %v730_v21  }
 0x962   :  { %v735_v1 = vld [vmem:[#allocation4] sm:$0xff]  ;;  %v736_v24 = vld [vmem:[#allocation4 + $0x8] sm:$0xff] }
 0x963   :  { %739 = vrot.lane.b32.xlu0 %v735_v1, %s1649_s1 }
 0x967   :  { %741 = vrot.lane.b32.xlu0 %v736_v24, %s1649_s1 }
 0x9d5   :  { %v740_v28 = vpop.permute.xlu0 %739 }
 0x9d6   :  { %v745_v29 = vsel %vm95_vm0, %v733_v27, %v740_v28 }
 0x9d7   :  { %1272 = vmatprep.mubr.msk.f32.mxu0 %vm188_vm3, %v745_v29 }
 0x9d9   :  { %v742_v31 = vpop.permute.xlu0 %741 }
 0x9da   :  { %v746_v32 = vsel %vm95_vm0, %v734_v30, %v742_v31 }
 0x9db   :  { %1273 = vmatmul.mubr.msk.f32.vlgmr.msra.gmra.mrb[0].mxu0 %vm188_vm3, %v746_v32 }
 0xaae   :  { %v1274_v36 = vpop.f32.mrb[0].mxu0 }
 0xaaf   :  { %v836_v37 = vadd.f32 %v1274_v36, %v1173_v35  ;;  %v830_v38 = vpop.f32.mrb[1].mxu0 }
 0xab0   :  { %v831_v39 = vadd.f32 %v1173_v35, %v830_v38 }
 0xab1   :  { %841 = vst.msk [vmem:[#allocation5 + $0x8] sm:$0xff] %vm839_vm7, %v836_v37 }
 0xab2   :  { %840 = vst.msk [vmem:[#allocation5] sm:$0xff] %vm839_vm7, %v831_v39 }
 0xab9   :  { %v845_v41 = vld [vmem:[#allocation5] sm:$0x3] }
 0xaba   :  { %v852_v42 = vadd.f32 %v1176_v40, %v845_v41  }
 0xabb LB: > { %v1671_v43 = vmov 1966171168   ;;  %v868_v45 = vshrl.u32 %v79_v16, 7  ;;  %s1177_s6 = sshll.u32 %s1634_s9, 1  ;;  %v1672_v63 = vmov 0   ;;  %vm924_vm10 = vcmask 1041409   ;;  %s1634_s9 = sphi %s1962_s9, %s858_s9   ;;  %v1630_v42 = vphi %v852_v42, %v2031_v42  }
 0xabc   : > { %v865_v44 = vunpack.c.l.s4 %v1671_v43  ;;  %s861_s7 = scalar_lea.vmem [#allocation5], %s1177_s6  ;;  %1469 = vset.pattern.permute.xlu1 %v1672_v63  ;;  %1468 = vset.pattern.permute.xlu0 %v1672_v63  ;;  %vm927_vm11 = vcmask 58368   ;;  %s926_s23 = scalar_lea.vmem [#allocation6], %s1177_s6 }
 0xabd   : > { %v888_v47 = vsub.s32 0, %v868_v45  ;;  %v939_v48 = vsub.s32 1, %v868_v45  ;;  %v862_v49 = vld [vmem:[%s861_s7] sm:$0x3]  ;;  %v918_v19 = vsub.s32 %v1808_v17, %v868_v45  ;;  %s858_s9 = sadd.s32 1, %s1634_s9  }
 0xabe   : > { %v866_v46 = vunpack.c.0.s8 %v865_v44  ;;  %p855_p12 = scmp.ge.s32.totalorder %s858_s9, 8  }
 0xabf   : > { %v933_v51 = vrot.slane %v862_v49, %v888_v47  ;;  %v940_v53 = vrot.slane %v862_v49, %v939_v48  ;;  %v1178_v27 = vld [vmem:[%s2028_s8] ss:$0 sm:$0xff] (%p855_p12)  ;;  %vm996_vm14 = vcmask (%p855_p12), 1024   ;;  %s1998_s8 = smov (%p855_p12), 0  }
 0xac0   : > { %v869_v50 = vsub.s32 %v866_v46, %v868_v45 }
 0xac1   : > { %935 = vbcast.lane.b32.xlu1 %v933_v51, 256 }
 0xac2   : > { %v870_v52 = vrot.slane %v1630_v42, %v869_v50 }
 0xac4   : > { %v878_v54 = vrot.slane %v870_v52, %v869_v50  ;;  %v871_v55 = vcombine.high %v870_v52, %v870_v52 }
 0xac5   : > { %942 = vbcast.lane.b32.xlu1 %v940_v53, 256 }
 0xac6   : > { %v889_v56 = vrot.slane %v878_v54, %v888_v47  ;;  %v885_v57 = vrot.slane %v871_v55, %v869_v50 }
 0xac8   : > { %v896_v58 = vadd.f32 %v889_v56, %v1949_v33  ;;  %v893_v59 = vrot.slane %v885_v57, %v888_v47 }
 0xaca   : > { %v898_v60 = vsel %vm839_vm7, %v896_v58, -inf  ;;  %v897_v61 = vadd.f32 %v893_v59, %v1949_v33 }
 0xacb   : > { %899 = vmax.xlane.f32.xlu0 %v898_v60 }
 0xacc   : > { %v901_v62 = vsel %vm839_vm7, %v897_v61, -inf }
 0xacf   : > { %902 = vmax.xlane.f32.xlu0 %v901_v62 }
 0xb33   : > { %v936_v10 = vpop.permute.xlu1 %935 }
 0xb37   : > { %v943_v11 = vpop.permute.xlu1 %942 }
 0xb58   : > { %v900_v0 = vpop.xlane.xlu0 %899 }
 0xb59   : > { %vm904_vm8 = vcmp.eq.f32.partialorder %v896_v58, %v900_v0  ;;  %v946_v13 = vadd.f32 %v936_v10, %v900_v0 }
 0xb5a   : > { %v906_v5 = vsel %vm904_vm8, %v843_v34, 8.0 }
 0xb5b   : > { %v908_v6 = vsel %vm839_vm7, %v906_v5, inf }
 0xb5c   : > { %909 = vmin.xlane.f32.xlu0 %v908_v6  ;;  %v903_v7 = vpop.xlane.xlu0 %902 }
 0xb5d   : > { %vm905_vm9 = vcmp.eq.f32.partialorder %v897_v61, %v903_v7  ;;  %v947_v12 = vadd.f32 %v943_v11, %v903_v7 }
 0xb5e   : > { %v907_v8 = vsel %vm905_vm9, %v843_v34, 8.0 }
 0xb5f   : > { %v911_v9 = vsel %vm839_vm7, %v907_v8, inf }
 0xb60   : > { %912 = vmin.xlane.f32.xlu1 %v911_v9 }
 0xb71   : > { %954 = vperm.xlu1 %1469, %v947_v12  }
 0xb72   : > { %951 = vperm.xlu0 %1468, %v946_v13  }
 0xbe9   : > { %v910_v14 = vpop.xlane.xlu0 %909 }
 0xbea   : > { %v1315_v15 = vtrunc.f32 %v910_v14 }
 0xbec   : > { %v1316_v20 = vcvt.f32.s32 %v1315_v15 }
 0xbed   : > { %v913_v18 = vpop.xlane.xlu1 %912 }
 0xbee   : > { %v1317_v21 = vtrunc.f32 %v913_v18  ;;  %v919_v3 = vrot.slane %v1316_v20, %v918_v19 }
 0xbef   :  { %857 = sbr.rel (!%p855_p12) target bundleno = 2747 (0xabb), region = 144 }
 0xbf0   : > { %v1318_v22 = vcvt.f32.s32 %v1317_v21 }
 0xbf1   : > { %v955_v1 = vpop.permute.xlu1 %954  ;;  %v952_v2 = vpop.permute.xlu0 %951 }
 0xbf2   : > { %v923_v4 = vrot.slane %v1318_v22, %v918_v19  ;;  %v963_v23 = vrot.slane %v955_v1, %v918_v19  ;;  %v959_v24 = vrot.slane %v952_v2, %v918_v19 }
 0xbf4   : > { %v925_v25 = vsel %vm924_vm10, %v923_v4, %v919_v3  ;;  %v964_v26 = vsel %vm924_vm10, %v963_v23, %v959_v24  }
 0xbf5   : > { %928 = vst.msk [vmem:[%s926_s23] sm:$0x3] %vm927_vm11, %v925_v25  ;;  %v2031_v42 = vmov %v964_v26  ;;  %v973_v28 = vadd.f32 (%p855_p12), %v1178_v27, %v964_v26 }
 0xbf7   :  { %v975_v29 = vsel %vm927_vm11, %v973_v28, -inf }
 0xbf8   :  { %976 = vmax.xlane.f32.xlu0 %v975_v29 }
 0xc85   :  { %v977_v30 = vpop.xlane.xlu0 %976 }
 0xc86   :  { %vm978_vm12 = vcmp.eq.f32.partialorder %v973_v28, %v977_v30 }
 0xc87   :  { %v979_v31 = vsel %vm978_vm12, %v1808_v17, 8 }
 0xc88   :  { %v980_v32 = vsel %vm927_vm11, %v979_v31, 2147483647 }
 0xc89   :  { %v982_v35 = vshra.s32 %v980_v32, 16  ;;  %v981_v37 = vand.u32 65535, %v980_v32 }
 0xc8b   :  { %v984_v36 = vcvt.s32.f32 %v982_v35  ;;  %v983_v39 = vcvt.s32.f32 %v981_v37 }
 0xc8d   :  { %985 = vmin.xlane.f32.xlu0 %v984_v36 }
 0xd1a   :  { %v986_v38 = vpop.xlane.xlu0 %985 }
 0xd1b   :  { %vm987_vm13 = vcmp.eq.f32.partialorder %v984_v36, %v986_v38  ;;  %v992_v33 = vcvt.f32.s32 %v986_v38 }
 0xd1c   :  { %v988_v16 = vsel %vm987_vm13, %v983_v39, inf }
 0xd1d   :  { %989 = vmin.xlane.f32.xlu1 %v988_v16  ;;  %v993_v40 = vshll.u32 %v992_v33, 16 }
 0xdaa   :  { %v990_v34 = vpop.xlane.xlu1 %989 }
 0xdab   :  { %v991_v41 = vcvt.f32.s32 %v990_v34 }
 0xdad   :  { %v994_v42 = vadd.s32 %v993_v40, %v991_v41  }
 0xdaf   :  { %997 = vst.msk [vmem:[#allocation7 + $0xe] sm:$0x3] %vm996_vm14, %v994_v42  ;;  %v1636_v43 = vmov %v994_v42  }
 0xdb0 LB: > { %s1006_s28 = ssub.s32 7, %s1642_s8  ;;  %vm1010_vm15 = vcmp.eq.s32.totalorder %v1808_v17, %v1638_v43  ;;  %s1005_s25 = ssub.s32 6, %s1642_s8  ;;  %s1642_s8 = sphi %s1998_s8, %s1003_s8   ;;  %v1638_v43 = vphi %v1636_v43, %v1024_v43  }
 0xdb1   : > { %s1179_s29 = sshll.u32 %s1006_s28, 1  ;;  %s1180_s26 = sshll.u32 %s1005_s25, 1 }
 0xdb2   : > { %s1008_s30 = scalar_lea.vmem [#allocation6], %s1179_s29  ;;  %s1026_s11 = scalar_lea.vmem [#allocation7], %s1180_s26 }
 0xdb3   : > { %v1009_v44 = vld [vmem:[%s1008_s30] sm:$0x3]  ;;  %s1003_s8 = sadd.s32 1, %s1642_s8  }
 0xdb4   : > { %v1011_v45 = vsel %vm1010_vm15, %v1009_v44, 0  ;;  %p1000_p13 = scmp.ge.s32.totalorder %s1003_s8, 7  }
 0xdb5   : > { %v1012_v46 = vsel %vm927_vm11, %v1011_v45, 0  ;;  %s1673_s12 = smov (%p1000_p13), 3   ;;  %s1674_s4 = smov (%p1000_p13), 2   ;;  %vm1056_vm0 = vcmask (%p1000_p13), 7168   ;;  %vm1058_vm1 = vcmask (%p1000_p13), 15360   ;;  %vm1060_vm2 = vcmask (%p1000_p13), 23552  }
 0xdb6   : > { %v1014_v47 = vshrl.u32 %v1012_v46, 16  ;;  %v1013_v48 = vand.u32 65535, %v1012_v46  ;;  %s1675_s13 = smov (%p1000_p13), 4   ;;  %s1676_s15 = smov (%p1000_p13), 5   ;;  %vm1062_vm3 = vcmask (%p1000_p13), 31744   ;;  %vm1064_vm4 = vcmask (%p1000_p13), 39936  }
 0xdb7   :  { %s1677_s17 = smov (%p1000_p13), 6   ;;  %s1678_s18 = smov (%p1000_p13), 7   ;;  %vm1066_vm5 = vcmask (%p1000_p13), 48128   ;;  %vm1068_vm6 = vcmask (%p1000_p13), 56320  }
 0xdb8   : > { %v1016_v49 = vcvt.s32.f32 %v1014_v47  ;;  %v1015_v50 = vcvt.s32.f32 %v1013_v48 }
 0xdba   : > { %1019 = vadd.xlane.f32.xlu0 %v1016_v49 }
 0xdbe   : > { %1017 = vadd.xlane.f32.xlu0 %v1015_v50 }
 0xe47   : > { %v1020_v51 = vpop.xlane.xlu0 %1019 }
 0xe48   : > { %v1022_v52 = vcvt.f32.s32 %v1020_v51 }
 0xe4a   : > { %v1023_v54 = vshll.u32 %v1022_v52, 16  ;;  %1002 = sbr.rel (!%p1000_p13) target bundleno = 3504 (0xdb0), region = 155 }
 0xe4b   : > { %v1018_v53 = vpop.xlane.xlu0 %1017 }
 0xe4c   : > { %v1021_v55 = vcvt.f32.s32 %v1018_v53 }
 0xe4e   : > { %v1024_v43 = vadd.s32 %v1023_v54, %v1021_v55  }
 0xe50   : > { %1027 = vst.msk [vmem:[%s1026_s11] sm:$0x3] %vm996_vm14, %v1024_v43 }
 0xe57   :  { %v1030_v56 = vld [vmem:[#allocation7 + $0x2] sm:$0x3]  ;;  %v1034_v57 = vld [vmem:[#allocation7 + $0x6] sm:$0x3]  ;;  %v1032_v58 = vld [vmem:[#allocation7 + $0x4] sm:$0x3] }
 0xe58   :  { %1042 = vrot.lane.b32.xlu0 %v1030_v56, %s1650_s16  ;;  %1046 = vrot.lane.b32.xlu1 %v1034_v57, %s1673_s12  ;;  %v1036_v59 = vld [vmem:[#allocation7 + $0x8] sm:$0x3]  ;;  %v1038_v60 = vld [vmem:[#allocation7 + $0xa] sm:$0x3]  ;;  %v1040_v61 = vld [vmem:[#allocation7 + $0xc] sm:$0x3] }
 0xe59   :  { %v1041_v62 = vld [vmem:[#allocation7 + $0xe] sm:$0x3]  ;;  %v1028_v0 = vld [vmem:[#allocation7] sm:$0x3]  ;;  %s1679_s16 = smov [#allocation14]  }
 0xe5a   :  { %s1077_s3 = sshll.u32 %s1679_s16, 4  ;;  %s1078_s3 = int_to_ptr.vmem [resolvable:$true] %s1077_s3 }
 0xe5b   :  { %s1536_s14 = scalar_lea.vmem %s1078_s3, 32  ;;  %p1541_p1 = scmp.lt.s32.totalorder %s1078_s3, %s1078_s3 }
 0xe5c   :  { %1044 = vrot.lane.b32.xlu0 %v1032_v58, %s1674_s4  ;;  %1048 = vrot.lane.b32.xlu1 %v1036_v59, %s1675_s13  ;;  %p1537_p0 = scmp.ne.s32.totalorder %s1078_s3, %s1536_s14  ;;  %p1542_p2 = scmp.lt.s32.totalorder %s1536_s14, %s1536_s14 }
 0xe5e   :  { %p1543_p3 = por %p1542_p2, %p1541_p1 }
 0xe60   :  { %1050 = vrot.lane.b32.xlu0 %v1038_v60, %s1676_s15  ;;  %1052 = vrot.lane.b32.xlu1 %v1040_v61, %s1677_s17  ;;  %p1544_p4 = pnand %p1543_p3, %p1537_p0 }
 0xe64   :  { %1054 = vrot.lane.b32.xlu0 %v1041_v62, %s1678_s18 }
 0xeca   :  { %v1043_v17 = vpop.permute.xlu0 %1042  ;;  %v1047_v63 = vpop.permute.xlu1 %1046 }
 0xecb   :  { %v1057_v5 = vsel %vm1056_vm0, %v1028_v0, %v1043_v17 }
 0xece   :  { %v1045_v6 = vpop.permute.xlu0 %1044  ;;  %v1049_v7 = vpop.permute.xlu1 %1048 }
 0xecf   :  { %v1059_v8 = vsel %vm1058_vm1, %v1057_v5, %v1045_v6 }
 0xed0   :  { %v1061_v9 = vsel %vm1060_vm2, %v1059_v8, %v1047_v63 }
 0xed1   :  { %v1063_v10 = vsel %vm1062_vm3, %v1061_v9, %v1049_v7 }
 0xed2   :  { %v1051_v11 = vpop.permute.xlu0 %1050  ;;  %v1053_v13 = vpop.permute.xlu1 %1052 }
 0xed3   :  { %v1065_v12 = vsel %vm1064_vm4, %v1063_v10, %v1051_v11 }
 0xed4   :  { %v1067_v14 = vsel %vm1066_vm5, %v1065_v12, %v1053_v13 }
 0xed6   :  { %v1055_v15 = vpop.permute.xlu0 %1054 }
 0xed7   :  { %v1069_v18 = vsel %vm1068_vm6, %v1067_v14, %v1055_v15 }
 0xed8   :  { %1070 = vst.msk [vmem:[#allocation14] sm:$0x3] %vm927_vm11, %v1069_v18 }
 0xed9   :  { %1547 = shalt.err (!%p1544_p4)
}
 0xeda   :  { %s1548_s5 = scalar_lea.hbm %s2030_s10, 32 }
 0xedb   :  { %p1549_p5 = scmp.ne.s32.totalorder %s2030_s10, %s1548_s5  ;;  %p1552_p6 = scmp.lt.u32.totalorder %s1548_s5, %s2030_s10 }
 0xedd   :  { %p1554_p7 = pnand %p1552_p6, %p1549_p5 }
 0xedf   :  { %1557 = shalt.err (!%p1554_p7)
}
 0xee0   :  { %1080 = dma.vmem_to_hbm [thread:$0]  %s1078_s3, 32, %s2030_s10, [#allocation10]  }
 0xee1   :  { %1602 = dma.done.wait [#allocation10], 32  }
 0xee2   :  { %1603 = vsyncadd [#allocation10], 4294967264 }
 0xee3   :  { %1084 = vsyncpa [#allocation9], 1 }
 0xee4   :  { %1085 = vsyncpa [#allocation12], 1 }
 0xee5   :  { %1086 = vsyncpa [#allocation10], 1 }

</bundles_post_ra>
